<compile_context>
chip_gen: v5e
topology: v5e:2x2
jax: 0.10.0
libtpu: 0.0.40
codegen_flags: <defaults>
</compile_context>

<pallas_src>
import jax
import jax.numpy as jnp
from jax.experimental import pallas as pl
from jax.experimental.pallas import tpu as pltpu


def _pick_tm(M, max_tm=512):
    """Largest row-tile <= max_tm that divides M (falls back to a single tile)."""
    for cand in (2048, 1024, 512, 256, 128, 64, 32, 16, 8):
        if cand <= max_tm and M % cand == 0:
            return cand
    return M  # single grid step; block == full array dims, always legal


# --------------------------------------------------------------------------
# Kernel 1: per-channel sum / sum-of-squares reduction (BatchNorm batch stats)
# --------------------------------------------------------------------------
def _bn_stats_kernel(x_ref, stats_ref):
    @pl.when(pl.program_id(0) == 0)
    def _():
        stats_ref[...] = jnp.zeros_like(stats_ref)

    x = x_ref[...]
    stats_ref[0:1, :] += jnp.sum(x, axis=0, keepdims=True)
    stats_ref[1:2, :] += jnp.sum(x * x, axis=0, keepdims=True)


def bn_batch_stats(x_flat, max_tm=512):
    """Returns (mean, biased var) per channel for a flattened (M, C) input."""
    M, C = x_flat.shape
    tm = _pick_tm(M, max_tm)
    stats = pl.pallas_call(
        _bn_stats_kernel,
        out_shape=jax.ShapeDtypeStruct((2, C), jnp.float32),
        grid_spec=pltpu.PrefetchScalarGridSpec(
            num_scalar_prefetch=0,
            grid=(M // tm,),
            in_specs=[pl.BlockSpec((tm, C), lambda i: (i, 0))],
            out_specs=pl.BlockSpec((2, C), lambda i: (0, 0))),
        compiler_params=pltpu.CompilerParams(
            dimension_semantics=("arbitrary",)),
    )(x_flat)
    mean = stats[0] / M
    var = jnp.maximum(stats[1] / M - mean * mean, 0.0)  # biased var, clamp >= 0
    return mean, var


# --------------------------------------------------------------------------
# Kernel 2: 1x1 conv (BN1 pre-folded into w/b) + ReLU, with BN2 batch stats
#           of the output accumulated in the epilogue.
# --------------------------------------------------------------------------
def _conv1x1_relu_stats_kernel(x_ref, w_ref, b_ref, o_ref, stats_ref):
    @pl.when(pl.program_id(0) == 0)
    def _():
        stats_ref[...] = jnp.zeros_like(stats_ref)

    y = jnp.dot(x_ref[...], w_ref[...], preferred_element_type=jnp.float32)
    y = jnp.maximum(y + b_ref[...], 0.0)
    o_ref[...] = y.astype(o_ref.dtype)

    # Fused BN2 statistics of the ReLU output (resident accumulator output).
    stats_ref[0:1, :] += jnp.sum(y, axis=0, keepdims=True)
    stats_ref[1:2, :] += jnp.sum(y * y, axis=0, keepdims=True)


def conv1x1_relu_stats(x_flat, w, b, max_tm=512):
    M, Cin = x_flat.shape
    Cout = w.shape[1]
    tm = _pick_tm(M, max_tm)
    y, stats = pl.pallas_call(
        _conv1x1_relu_stats_kernel,
        out_shape=(jax.ShapeDtypeStruct((M, Cout), jnp.float32),
                   jax.ShapeDtypeStruct((2, Cout), jnp.float32)),
        grid_spec=pltpu.PrefetchScalarGridSpec(
            num_scalar_prefetch=0,
            grid=(M // tm,),
            in_specs=[pl.BlockSpec((tm, Cin), lambda i: (i, 0)),
                      pl.BlockSpec((Cin, Cout), lambda i: (0, 0)),
                      pl.BlockSpec((1, Cout), lambda i: (0, 0))],
            out_specs=[pl.BlockSpec((tm, Cout), lambda i: (i, 0)),
                       pl.BlockSpec((2, Cout), lambda i: (0, 0))]),
        # resident stats accumulator -> sequential grid axis
        compiler_params=pltpu.CompilerParams(
            dimension_semantics=("arbitrary",)),
    )(x_flat, w, b)
    return y, stats


# --------------------------------------------------------------------------
# Kernel 3: fused BN-affine + 3x3 conv (padding=1) + bias + ReLU, per batch elem
# --------------------------------------------------------------------------
def _bn_conv3x3_relu_kernel(x_ref, scale_ref, off_ref, w_ref, b_ref, o_ref,
                            pad_ref, acc_ref):
    _, H, W, Cin = x_ref.shape
    Cout = o_ref.shape[-1]

    # Zero only the 1-wide border; the interior is fully overwritten each step.
    # (Safe under "parallel" megacore sharding: no cross-step scratch state.)
    pad_ref[0:1, :, :] = jnp.zeros((1, W + 2, Cin), pad_ref.dtype)
    pad_ref[H + 1:H + 2, :, :] = jnp.zeros((1, W + 2, Cin), pad_ref.dtype)
    pad_ref[:, 0:1, :] = jnp.zeros((H + 2, 1, Cin), pad_ref.dtype)
    pad_ref[:, W + 1:W + 2, :] = jnp.zeros((H + 2, 1, Cin), pad_ref.dtype)

    # BN affine (batch stats folded into scale/offset), applied BEFORE the
    # zero padding — matches BN -> Conv2d(padding=1) ordering exactly.
    pad_ref[1:H + 1, 1:W + 1, :] = x_ref[0] * scale_ref[...] + off_ref[...]

    # 3x3 conv as 9 shifted-tap matmuls, accumulated in a VMEM scratch.
    # TODO(synk): for large spatial sizes, realize the column shifts with
    # pltpu.roll on a flattened slab and row-tile the grid with a halo.
    for di in range(3):
        for dj in range(3):
            patch = pad_ref[di:di + H, dj:dj + W, :].reshape(H * W, Cin)
            tap = jnp.dot(patch, w_ref[di, dj],
                          preferred_element_type=jnp.float32)
            if di == 0 and dj == 0:
                acc_ref[...] = tap
            else:
                acc_ref[...] += tap

    y = jnp.maximum(acc_ref[...] + b_ref[...], 0.0)
    o_ref[0] = y.reshape(H, W, Cout).astype(o_ref.dtype)


def bn_conv3x3_relu(x, scale, offset, w, b):
    N, H, W, Cin = x.shape
    Cout = w.shape[-1]
    return pl.pallas_call(
        _bn_conv3x3_relu_kernel,
        out_shape=jax.ShapeDtypeStruct((N, H, W, Cout), jnp.float32),
        grid_spec=pltpu.PrefetchScalarGridSpec(
            num_scalar_prefetch=0,
            grid=(N,),
            in_specs=[pl.BlockSpec((1, H, W, Cin), lambda n: (n, 0, 0, 0)),
                      pl.BlockSpec((1, Cin), lambda n: (0, 0)),
                      pl.BlockSpec((1, Cin), lambda n: (0, 0)),
                      pl.BlockSpec((3, 3, Cin, Cout), lambda n: (0, 0, 0, 0)),
                      pl.BlockSpec((1, Cout), lambda n: (0, 0))],
            out_specs=pl.BlockSpec((1, H, W, Cout), lambda n: (n, 0, 0, 0)),
            scratch_shapes=[pltpu.VMEM((H + 2, W + 2, Cin), jnp.float32),
                            pltpu.VMEM((H * W, Cout), jnp.float32)]),
        compiler_params=pltpu.CompilerParams(
            dimension_semantics=("parallel",)),
    )(x, scale, offset, w, b)


# --------------------------------------------------------------------------
# Full Ratio forward
# --------------------------------------------------------------------------
def ratio_forward(x_nchw, params, eps=1e-5):
    N, Cin, H, W = x_nchw.shape
    Hd, Wd = H // 2, W // 2
    Cmid = params["w1"].shape[1]
    Cout = params["w2"].shape[-1]

    x = jnp.transpose(x_nchw, (0, 2, 3, 1)).astype(jnp.float32)  # NCHW -> NHWC

    # ---- BN1 batch statistics over the FULL input (as the module does) ----
    mean1, var1 = bn_batch_stats(x.reshape(N * H * W, Cin))
    inv1 = params["gamma1"] / jnp.sqrt(var1 + eps)
    off1 = params["beta1"] - mean1 * inv1
    # Fold BN1 affine into the 1x1 conv (exact: 1x1 conv has no padding).
    w1f = inv1[:, None] * params["w1"]                       # (Cin, Cmid)
    b1f = off1 @ params["w1"] + params["b1"]                 # (Cmid,)

    # ---- Nearest downsample x0.5 commutes with the pointwise BN+1x1+ReLU, ----
    # ---- so run the conv only on the subsampled pixel set (4x fewer FLOPs). --
    x_ds = x[:, ::2, ::2, :].reshape(N * Hd * Wd, Cin)
    y1d_flat, stats2 = conv1x1_relu_stats(x_ds, w1f, b1f.reshape(1, Cmid))

    # ---- BN2 batch statistics (fused into the kernel above) ----
    M2 = N * Hd * Wd
    mean2 = stats2[0] / M2
    var2 = jnp.maximum(stats2[1] / M2 - mean2 * mean2, 0.0)
    inv2 = params["gamma2"] / jnp.sqrt(var2 + eps)
    scale2 = inv2.reshape(1, Cmid)
    off2 = (params["beta2"] - mean2 * inv2).reshape(1, Cmid)

    # ---- BN2 + 3x3 conv (pad=1) + ReLU at downsampled resolution ----
    y1d = y1d_flat.reshape(N, Hd, Wd, Cmid)
    y2 = bn_conv3x3_relu(y1d, scale2, off2,
                         params["w2"], params["b2"].reshape(1, Cout))

    # ---- Nearest upsample x2 + back to NCHW, one broadcast/reshape pass ----
    y2_nchw = jnp.transpose(y2, (0, 3, 1, 2))                # (N, Cout, Hd, Wd)
    out = jnp.broadcast_to(y2_nchw[:, :, :, None, :, None],
                           (N, Cout, Hd, 2, Wd, 2)).reshape(N, Cout, H, W)
    return out


# --------------------------------------------------------------------------
# Pure-jnp reference (same math) for a correctness check at toy scale.
# --------------------------------------------------------------------------
def ratio_reference(x_nchw, params, eps=1e-5):
    x = jnp.transpose(x_nchw, (0, 2, 3, 1)).astype(jnp.float32)
    N, H, W, Cin = x.shape
    xf = x.reshape(-1, Cin)
    m1, v1 = xf.mean(0), xf.var(0)
    xn = (x - m1) / jnp.sqrt(v1 + eps) * params["gamma1"] + params["beta1"]
    y1 = jnp.maximum(jnp.einsum("nhwc,cd->nhwd", xn, params["w1"])
                     + params["b1"], 0.0)
    y1d = y1[:, ::2, ::2, :]
    Cmid = y1d.shape[-1]
    f = y1d.reshape(-1, Cmid)
    m2, v2 = f.mean(0), f.var(0)
    y1n = (y1d - m2) / jnp.sqrt(v2 + eps) * params["gamma2"] + params["beta2"]
    Hd, Wd = y1d.shape[1], y1d.shape[2]
    Cout = params["w2"].shape[-1]
    y1p = jnp.pad(y1n, ((0, 0), (1, 1), (1, 1), (0, 0)))
    acc = jnp.zeros((N, Hd, Wd, Cout), jnp.float32)
    for di in range(3):
        for dj in range(3):
            acc = acc + jnp.einsum("nhwc,cd->nhwd",
                                   y1p[:, di:di + Hd, dj:dj + Wd, :],
                                   params["w2"][di, dj])
    y2 = jnp.maximum(acc + params["b2"], 0.0)
    y2u = jnp.repeat(jnp.repeat(y2, 2, axis=1), 2, axis=2)
    return jnp.transpose(y2u, (0, 3, 1, 2))


def init_params(key, in_channels, out_channels):
    cmid = out_channels // 2
    k = jax.random.split(key, 8)
    return {
        "gamma1": 1.0 + 0.1 * jax.random.normal(k[0], (in_channels,), jnp.float32),
        "beta1": 0.1 * jax.random.normal(k[1], (in_channels,), jnp.float32),
        # conv1 PyTorch weight (cmid, in, 1, 1) stored as (in, cmid)
        "w1": 0.2 * jax.random.normal(k[2], (in_channels, cmid), jnp.float32),
        "b1": 0.05 * jax.random.normal(k[3], (cmid,), jnp.float32),
        "gamma2": 1.0 + 0.1 * jax.random.normal(k[4], (cmid,), jnp.float32),
        "beta2": 0.1 * jax.random.normal(k[5], (cmid,), jnp.float32),
        # conv2 PyTorch weight (out, cmid, 3, 3) stored as (3, 3, cmid, out)
        "w2": 0.2 * jax.random.normal(k[6], (3, 3, cmid, out_channels), jnp.float32),
        "b2": 0.05 * jax.random.normal(k[7], (out_channels,), jnp.float32),
    }


if __name__ == "__main__":
    key = jax.random.PRNGKey(0)
    kx, kp = jax.random.split(key)

    N, Cin, H, W = 2, 4, 16, 16
    Cout = 8

    x = jax.random.normal(kx, (N, Cin, H, W), jnp.float32)
    params = init_params(kp, Cin, Cout)

    out = jax.jit(ratio_forward)(x, params)
    out = jax.block_until_ready(out)

    ref = ratio_reference(x, params)

    assert out.shape == (N, Cout, H, W), out.shape
    assert bool(jnp.all(jnp.isfinite(out)))
    assert bool(jnp.allclose(out, ref, rtol=1e-3, atol=1e-3)), (
        float(jnp.max(jnp.abs(out - ref))))
    print("KERNEL_OK")
</pallas_src>

<mosaic_0001>
module attributes {stable_mosaic.version = 11 : i64} {
  func.func @_bn_stats_kernel(%arg0: i32, %arg1: memref<512x4xf32, #tpu.memory_space<vmem>>, %arg2: memref<2x4xf32, #tpu.memory_space<vmem>>) attributes {dimension_semantics = [#tpu.dimension_semantics<arbitrary>], iteration_bounds = array<i64: 1>, scalar_prefetch = 0 : i64, scratch_operands = 0 : i64, tpu.core_type = #tpu.core_type<tc>, window_params = [{transform_indices = @transform_0, window_bounds = array<i64: 512, 4>}, {pipeline_mode = #tpu.pipeline_mode<synchronous>, transform_indices = @transform_1, window_bounds = array<i64: 2, 4>}]} {
    %c0_i32 = arith.constant 0 : i32
    %0 = arith.cmpi eq, %arg0, %c0_i32 : i32
    %1 = arith.extui %0 : i1 to i32
    %c0_i32_0 = arith.constant 0 : i32
    %2 = arith.cmpi ne, %1, %c0_i32_0 : i32
    scf.if %2 {
      %cst_10 = arith.constant 0.000000e+00 : f32
      %15 = vector.broadcast %cst_10 : f32 to vector<2x4xf32>
      %c0_11 = arith.constant 0 : index
      %c0_12 = arith.constant 0 : index
      %16 = vector.load %arg2[%c0_11, %c0_12] : memref<2x4xf32, #tpu.memory_space<vmem>>, vector<2x4xf32>
      tpu.vector_store %arg2[%c0_11, %c0_12], %15 {strides = array<i32>} : memref<2x4xf32, #tpu.memory_space<vmem>>, vector<2x4xf32>,
    } else {
    }
    %c0 = arith.constant 0 : index
    %c0_1 = arith.constant 0 : index
    %3 = vector.load %arg1[%c0, %c0_1] : memref<512x4xf32, #tpu.memory_space<vmem>>, vector<512x4xf32>
    %c0_2 = arith.constant 0 : index
    %c0_3 = arith.constant 0 : index
    %4 = vector.load %arg2[%c0_2, %c0_3] : memref<2x4xf32, #tpu.memory_space<vmem>>, vector<1x4xf32>
    %cst = arith.constant dense<0.000000e+00> : vector<4xf32>
    %5 = vector.multi_reduction <add>, %3, %cst [0] : vector<512x4xf32> to vector<4xf32>
    %6 = vector.shape_cast %5 : vector<4xf32> to vector<1x4xf32>
    %7 = arith.addf %4, %6 : vector<1x4xf32>
    %c0_4 = arith.constant 0 : index
    %c0_5 = arith.constant 0 : index
    %8 = vector.load %arg2[%c0_4, %c0_5] : memref<2x4xf32, #tpu.memory_space<vmem>>, vector<1x4xf32>
    tpu.vector_store %arg2[%c0_4, %c0_5], %7 {strides = array<i32>} : memref<2x4xf32, #tpu.memory_space<vmem>>, vector<1x4xf32>,
    %c1 = arith.constant 1 : index
    %c0_6 = arith.constant 0 : index
    %9 = vector.load %arg2[%c1, %c0_6] : memref<2x4xf32, #tpu.memory_space<vmem>>, vector<1x4xf32>
    %10 = arith.mulf %3, %3 : vector<512x4xf32>
    %cst_7 = arith.constant dense<0.000000e+00> : vector<4xf32>
    %11 = vector.multi_reduction <add>, %10, %cst_7 [0] : vector<512x4xf32> to vector<4xf32>
    %12 = vector.shape_cast %11 : vector<4xf32> to vector<1x4xf32>
    %13 = arith.addf %9, %12 : vector<1x4xf32>
    %c1_8 = arith.constant 1 : index
    %c0_9 = arith.constant 0 : index
    %14 = vector.load %arg2[%c1_8, %c0_9] : memref<2x4xf32, #tpu.memory_space<vmem>>, vector<1x4xf32>
    tpu.vector_store %arg2[%c1_8, %c0_9], %13 {strides = array<i32>} : memref<2x4xf32, #tpu.memory_space<vmem>>, vector<1x4xf32>,
    return
  }
  func.func @transform_0(%arg0: i32) -> (i32, i32) {
    %c0_i32 = arith.constant 0 : i32
    %c0_i32_0 = arith.constant 0 : i32
    return %arg0, %c0_i32 : i32, i32
  }
  func.func @transform_1(%arg0: i32) -> (i32, i32) {
    %c0_i32 = arith.constant 0 : i32
    %c0_i32_0 = arith.constant 0 : i32
    %c0_i32_1 = arith.constant 0 : i32
    return %c0_i32, %c0_i32_0 : i32, i32
  }
}

module attributes {stable_mosaic.version = 11 : i64} {
  func.func @_conv1x1_relu_stats_kernel(%arg0: i32, %arg1: memref<128x4xf32, #tpu.memory_space<vmem>>, %arg2: memref<4x4xf32, #tpu.memory_space<vmem>>, %arg3: memref<1x4xf32, #tpu.memory_space<vmem>>, %arg4: memref<128x4xf32, #tpu.memory_space<vmem>>, %arg5: memref<2x4xf32, #tpu.memory_space<vmem>>) attributes {dimension_semantics = [#tpu.dimension_semantics<arbitrary>], iteration_bounds = array<i64: 1>, scalar_prefetch = 0 : i64, scratch_operands = 0 : i64, tpu.core_type = #tpu.core_type<tc>, window_params = [{transform_indices = @transform_0, window_bounds = array<i64: 128, 4>}, {pipeline_mode = #tpu.pipeline_mode<synchronous>, transform_indices = @transform_1, window_bounds = array<i64: 4, 4>}, {pipeline_mode = #tpu.pipeline_mode<synchronous>, transform_indices = @transform_2, window_bounds = array<i64: 1, 4>}, {transform_indices = @transform_3, window_bounds = array<i64: 128, 4>}, {pipeline_mode = #tpu.pipeline_mode<synchronous>, transform_indices = @transform_4, window_bounds = array<i64: 2, 4>}]} {
    %c0_i32 = arith.constant 0 : i32
    %0 = arith.cmpi eq, %arg0, %c0_i32 : i32
    %1 = arith.extui %0 : i1 to i32
    %c0_i32_0 = arith.constant 0 : i32
    %2 = arith.cmpi ne, %1, %c0_i32_0 : i32
    scf.if %2 {
      %cst_18 = arith.constant 0.000000e+00 : f32
      %23 = vector.broadcast %cst_18 : f32 to vector<2x4xf32>
      %c0_19 = arith.constant 0 : index
      %c0_20 = arith.constant 0 : index
      %24 = vector.load %arg5[%c0_19, %c0_20] : memref<2x4xf32, #tpu.memory_space<vmem>>, vector<2x4xf32>
      tpu.vector_store %arg5[%c0_19, %c0_20], %23 {strides = array<i32>} : memref<2x4xf32, #tpu.memory_space<vmem>>, vector<2x4xf32>,
    } else {
    }
    %c0 = arith.constant 0 : index
    %c0_1 = arith.constant 0 : index
    %3 = vector.load %arg1[%c0, %c0_1] : memref<128x4xf32, #tpu.memory_space<vmem>>, vector<128x4xf32>
    %c0_2 = arith.constant 0 : index
    %c0_3 = arith.constant 0 : index
    %4 = vector.load %arg2[%c0_2, %c0_3] : memref<4x4xf32, #tpu.memory_space<vmem>>, vector<4x4xf32>
    %cst = arith.constant dense<0.000000e+00> : vector<128x4xf32>
    %5 = tpu.matmul %3, %4, %cst {dimension_numbers = #tpu.dot_dimension_numbers<[1], [0], [0], [1], [0, 0, 1, 1], [], []>} : vector<128x4xf32>, vector<4x4xf32>, vector<128x4xf32> -> vector<128x4xf32>
    %c0_4 = arith.constant 0 : index
    %c0_5 = arith.constant 0 : index
    %6 = vector.load %arg3[%c0_4, %c0_5] : memref<1x4xf32, #tpu.memory_space<vmem>>, vector<1x4xf32>
    %7 = vector.broadcast %6 : vector<1x4xf32> to vector<128x4xf32>
    %8 = arith.addf %5, %7 : vector<128x4xf32>
    %cst_6 = arith.constant 0.000000e+00 : f32
    %9 = vector.broadcast %cst_6 : f32 to vector<128x4xf32>
    %10 = arith.maximumf %8, %9 : vector<128x4xf32>
    %c0_7 = arith.constant 0 : index
    %c0_8 = arith.constant 0 : index
    %11 = vector.load %arg4[%c0_7, %c0_8] : memref<128x4xf32, #tpu.memory_space<vmem>>, vector<128x4xf32>
    tpu.vector_store %arg4[%c0_7, %c0_8], %10 {strides = array<i32>} : memref<128x4xf32, #tpu.memory_space<vmem>>, vector<128x4xf32>,
    %c0_9 = arith.constant 0 : index
    %c0_10 = arith.constant 0 : index
    %12 = vector.load %arg5[%c0_9, %c0_10] : memref<2x4xf32, #tpu.memory_space<vmem>>, vector<1x4xf32>
    %cst_11 = arith.constant dense<0.000000e+00> : vector<4xf32>
    %13 = vector.multi_reduction <add>, %10, %cst_11 [0] : vector<128x4xf32> to vector<4xf32>
    %14 = vector.shape_cast %13 : vector<4xf32> to vector<1x4xf32>
    %15 = arith.addf %12, %14 : vector<1x4xf32>
    %c0_12 = arith.constant 0 : index
    %c0_13 = arith.constant 0 : index
    %16 = vector.load %arg5[%c0_12, %c0_13] : memref<2x4xf32, #tpu.memory_space<vmem>>, vector<1x4xf32>
    tpu.vector_store %arg5[%c0_12, %c0_13], %15 {strides = array<i32>} : memref<2x4xf32, #tpu.memory_space<vmem>>, vector<1x4xf32>,
    %c1 = arith.constant 1 : index
    %c0_14 = arith.constant 0 : index
    %17 = vector.load %arg5[%c1, %c0_14] : memref<2x4xf32, #tpu.memory_space<vmem>>, vector<1x4xf32>
    %18 = arith.mulf %10, %10 : vector<128x4xf32>
    %cst_15 = arith.constant dense<0.000000e+00> : vector<4xf32>
    %19 = vector.multi_reduction <add>, %18, %cst_15 [0] : vector<128x4xf32> to vector<4xf32>
    %20 = vector.shape_cast %19 : vector<4xf32> to vector<1x4xf32>
    %21 = arith.addf %17, %20 : vector<1x4xf32>
    %c1_16 = arith.constant 1 : index
    %c0_17 = arith.constant 0 : index
    %22 = vector.load %arg5[%c1_16, %c0_17] : memref<2x4xf32, #tpu.memory_space<vmem>>, vector<1x4xf32>
    tpu.vector_store %arg5[%c1_16, %c0_17], %21 {strides = array<i32>} : memref<2x4xf32, #tpu.memory_space<vmem>>, vector<1x4xf32>,
    return
  }
  func.func @transform_0(%arg0: i32) -> (i32, i32) {
    %c0_i32 = arith.constant 0 : i32
    %c0_i32_0 = arith.constant 0 : i32
    return %arg0, %c0_i32 : i32, i32
  }
  func.func @transform_1(%arg0: i32) -> (i32, i32) {
    %c0_i32 = arith.constant 0 : i32
    %c0_i32_0 = arith.constant 0 : i32
    %c0_i32_1 = arith.constant 0 : i32
    return %c0_i32, %c0_i32_0 : i32, i32
  }
  func.func @transform_2(%arg0: i32) -> (i32, i32) {
    %c0_i32 = arith.constant 0 : i32
    %c0_i32_0 = arith.constant 0 : i32
    %c0_i32_1 = arith.constant 0 : i32
    return %c0_i32, %c0_i32_0 : i32, i32
  }
  func.func @transform_3(%arg0: i32) -> (i32, i32) {
    %c0_i32 = arith.constant 0 : i32
    %c0_i32_0 = arith.constant 0 : i32
    return %arg0, %c0_i32 : i32, i32
  }
  func.func @transform_4(%arg0: i32) -> (i32, i32) {
    %c0_i32 = arith.constant 0 : i32
    %c0_i32_0 = arith.constant 0 : i32
    %c0_i32_1 = arith.constant 0 : i32
    return %c0_i32, %c0_i32_0 : i32, i32
  }
}

module attributes {stable_mosaic.version = 11 : i64} {
  func.func @_bn_conv3x3_relu_kernel(%arg0: i32, %arg1: memref<1x8x8x4xf32, #tpu.memory_space<vmem>>, %arg2: memref<1x4xf32, #tpu.memory_space<vmem>>, %arg3: memref<1x4xf32, #tpu.memory_space<vmem>>, %arg4: memref<3x3x4x8xf32, #tpu.memory_space<vmem>>, %arg5: memref<1x8xf32, #tpu.memory_space<vmem>>, %arg6: memref<1x8x8x8xf32, #tpu.memory_space<vmem>>, %arg7: memref<10x10x4xf32, #tpu.memory_space<vmem>>, %arg8: memref<64x8xf32, #tpu.memory_space<vmem>>) attributes {dimension_semantics = [#tpu.dimension_semantics<parallel>], iteration_bounds = array<i64: 2>, scalar_prefetch = 0 : i64, scratch_operands = 2 : i64, tpu.core_type = #tpu.core_type<tc>, window_params = [{transform_indices = @transform_0, window_bounds = array<i64: 1, 8, 8, 4>}, {pipeline_mode = #tpu.pipeline_mode<synchronous>, transform_indices = @transform_1, window_bounds = array<i64: 1, 4>}, {pipeline_mode = #tpu.pipeline_mode<synchronous>, transform_indices = @transform_2, window_bounds = array<i64: 1, 4>}, {pipeline_mode = #tpu.pipeline_mode<synchronous>, transform_indices = @transform_3, window_bounds = array<i64: 3, 3, 4, 8>}, {pipeline_mode = #tpu.pipeline_mode<synchronous>, transform_indices = @transform_4, window_bounds = array<i64: 1, 8>}, {transform_indices = @transform_5, window_bounds = array<i64: 1, 8, 8, 8>}]} {
    %cst = arith.constant 0.000000e+00 : f32
    %0 = vector.broadcast %cst : f32 to vector<1x10x4xf32>
    %c0 = arith.constant 0 : index
    %c0_0 = arith.constant 0 : index
    %c0_1 = arith.constant 0 : index
    %1 = vector.load %arg7[%c0, %c0_0, %c0_1] : memref<10x10x4xf32, #tpu.memory_space<vmem>>, vector<1x10x4xf32>
    tpu.vector_store %arg7[%c0, %c0_0, %c0_1], %0 {strides = array<i32>} : memref<10x10x4xf32, #tpu.memory_space<vmem>>, vector<1x10x4xf32>,
    %cst_2 = arith.constant 0.000000e+00 : f32
    %2 = vector.broadcast %cst_2 : f32 to vector<1x10x4xf32>
    %c9 = arith.constant 9 : index
    %c0_3 = arith.constant 0 : index
    %c0_4 = arith.constant 0 : index
    %3 = vector.load %arg7[%c9, %c0_3, %c0_4] : memref<10x10x4xf32, #tpu.memory_space<vmem>>, vector<1x10x4xf32>
    tpu.vector_store %arg7[%c9, %c0_3, %c0_4], %2 {strides = array<i32>} : memref<10x10x4xf32, #tpu.memory_space<vmem>>, vector<1x10x4xf32>,
    %cst_5 = arith.constant 0.000000e+00 : f32
    %4 = vector.broadcast %cst_5 : f32 to vector<10x1x4xf32>
    %c0_6 = arith.constant 0 : index
    %c0_7 = arith.constant 0 : index
    %c0_8 = arith.constant 0 : index
    %5 = vector.load %arg7[%c0_6, %c0_7, %c0_8] : memref<10x10x4xf32, #tpu.memory_space<vmem>>, vector<10x1x4xf32>
    tpu.vector_store %arg7[%c0_6, %c0_7, %c0_8], %4 {strides = array<i32>} : memref<10x10x4xf32, #tpu.memory_space<vmem>>, vector<10x1x4xf32>,
    %cst_9 = arith.constant 0.000000e+00 : f32
    %6 = vector.broadcast %cst_9 : f32 to vector<10x1x4xf32>
    %c0_10 = arith.constant 0 : index
    %c9_11 = arith.constant 9 : index
    %c0_12 = arith.constant 0 : index
    %7 = vector.load %arg7[%c0_10, %c9_11, %c0_12] : memref<10x10x4xf32, #tpu.memory_space<vmem>>, vector<10x1x4xf32>
    tpu.vector_store %arg7[%c0_10, %c9_11, %c0_12], %6 {strides = array<i32>} : memref<10x10x4xf32, #tpu.memory_space<vmem>>, vector<10x1x4xf32>,
    %c0_13 = arith.constant 0 : index
    %c0_14 = arith.constant 0 : index
    %c0_15 = arith.constant 0 : index
    %c0_16 = arith.constant 0 : index
    %8 = vector.load %arg1[%c0_13, %c0_14, %c0_15, %c0_16] : memref<1x8x8x4xf32, #tpu.memory_space<vmem>>, vector<1x8x8x4xf32>
    %9 = vector.shape_cast %8 : vector<1x8x8x4xf32> to vector<8x8x4xf32>
    %c0_17 = arith.constant 0 : index
    %c0_18 = arith.constant 0 : index
    %10 = vector.load %arg2[%c0_17, %c0_18] : memref<1x4xf32, #tpu.memory_space<vmem>>, vector<1x4xf32>
    %11 = vector.shape_cast %10 : vector<1x4xf32> to vector<1x1x4xf32>
    %12 = vector.broadcast %11 : vector<1x1x4xf32> to vector<8x8x4xf32>
    %13 = arith.mulf %9, %12 : vector<8x8x4xf32>
    %c0_19 = arith.constant 0 : index
    %c0_20 = arith.constant 0 : index
    %14 = vector.load %arg3[%c0_19, %c0_20] : memref<1x4xf32, #tpu.memory_space<vmem>>, vector<1x4xf32>
    %15 = vector.shape_cast %14 : vector<1x4xf32> to vector<1x1x4xf32>
    %16 = vector.broadcast %15 : vector<1x1x4xf32> to vector<8x8x4xf32>
    %17 = arith.addf %13, %16 : vector<8x8x4xf32>
    %c1 = arith.constant 1 : index
    %c1_21 = arith.constant 1 : index
    %c0_22 = arith.constant 0 : index
    %18 = vector.load %arg7[%c1, %c1_21, %c0_22] : memref<10x10x4xf32, #tpu.memory_space<vmem>>, vector<8x8x4xf32>
    tpu.vector_store %arg7[%c1, %c1_21, %c0_22], %17 {strides = array<i32>} : memref<10x10x4xf32, #tpu.memory_space<vmem>>, vector<8x8x4xf32>,
    %c0_23 = arith.constant 0 : index
    %c0_24 = arith.constant 0 : index
    %c0_25 = arith.constant 0 : index
    %19 = vector.load %arg7[%c0_23, %c0_24, %c0_25] : memref<10x10x4xf32, #tpu.memory_space<vmem>>, vector<8x8x4xf32>
    %20 = vector.shape_cast %19 : vector<8x8x4xf32> to vector<64x4xf32>
    %c0_26 = arith.constant 0 : index
    %c0_27 = arith.constant 0 : index
    %c0_28 = arith.constant 0 : index
    %c0_29 = arith.constant 0 : index
    %21 = vector.load %arg4[%c0_26, %c0_27, %c0_28, %c0_29] : memref<3x3x4x8xf32, #tpu.memory_space<vmem>>, vector<1x1x4x8xf32>
    %22 = vector.shape_cast %21 : vector<1x1x4x8xf32> to vector<4x8xf32>
    %cst_30 = arith.constant dense<0.000000e+00> : vector<64x8xf32>
    %23 = tpu.matmul %20, %22, %cst_30 {dimension_numbers = #tpu.dot_dimension_numbers<[1], [0], [0], [1], [0, 0, 1, 1], [], []>} : vector<64x4xf32>, vector<4x8xf32>, vector<64x8xf32> -> vector<64x8xf32>
    %c0_31 = arith.constant 0 : index
    %c0_32 = arith.constant 0 : index
    %24 = vector.load %arg8[%c0_31, %c0_32] : memref<64x8xf32, #tpu.memory_space<vmem>>, vector<64x8xf32>
    tpu.vector_store %arg8[%c0_31, %c0_32], %23 {strides = array<i32>} : memref<64x8xf32, #tpu.memory_space<vmem>>, vector<64x8xf32>,
    %c0_33 = arith.constant 0 : index
    %c1_34 = arith.constant 1 : index
    %c0_35 = arith.constant 0 : index
    %25 = vector.load %arg7[%c0_33, %c1_34, %c0_35] : memref<10x10x4xf32, #tpu.memory_space<vmem>>, vector<8x8x4xf32>
    %26 = vector.shape_cast %25 : vector<8x8x4xf32> to vector<64x4xf32>
    %c0_36 = arith.constant 0 : index
    %c1_37 = arith.constant 1 : index
    %c0_38 = arith.constant 0 : index
    %c0_39 = arith.constant 0 : index
    %27 = vector.load %arg4[%c0_36, %c1_37, %c0_38, %c0_39] : memref<3x3x4x8xf32, #tpu.memory_space<vmem>>, vector<1x1x4x8xf32>
    %28 = vector.shape_cast %27 : vector<1x1x4x8xf32> to vector<4x8xf32>
    %cst_40 = arith.constant dense<0.000000e+00> : vector<64x8xf32>
    %29 = tpu.matmul %26, %28, %cst_40 {dimension_numbers = #tpu.dot_dimension_numbers<[1], [0], [0], [1], [0, 0, 1, 1], [], []>} : vector<64x4xf32>, vector<4x8xf32>, vector<64x8xf32> -> vector<64x8xf32>
    %c0_41 = arith.constant 0 : index
    %c0_42 = arith.constant 0 : index
    %30 = vector.load %arg8[%c0_41, %c0_42] : memref<64x8xf32, #tpu.memory_space<vmem>>, vector<64x8xf32>
    %31 = arith.addf %30, %29 : vector<64x8xf32>
    %c0_43 = arith.constant 0 : index
    %c0_44 = arith.constant 0 : index
    %32 = vector.load %arg8[%c0_43, %c0_44] : memref<64x8xf32, #tpu.memory_space<vmem>>, vector<64x8xf32>
    tpu.vector_store %arg8[%c0_43, %c0_44], %31 {strides = array<i32>} : memref<64x8xf32, #tpu.memory_space<vmem>>, vector<64x8xf32>,
    %c0_45 = arith.constant 0 : index
    %c2 = arith.constant 2 : index
    %c0_46 = arith.constant 0 : index
    %33 = vector.load %arg7[%c0_45, %c2, %c0_46] : memref<10x10x4xf32, #tpu.memory_space<vmem>>, vector<8x8x4xf32>
    %34 = vector.shape_cast %33 : vector<8x8x4xf32> to vector<64x4xf32>
    %c0_47 = arith.constant 0 : index
    %c2_48 = arith.constant 2 : index
    %c0_49 = arith.constant 0 : index
    %c0_50 = arith.constant 0 : index
    %35 = vector.load %arg4[%c0_47, %c2_48, %c0_49, %c0_50] : memref<3x3x4x8xf32, #tpu.memory_space<vmem>>, vector<1x1x4x8xf32>
    %36 = vector.shape_cast %35 : vector<1x1x4x8xf32> to vector<4x8xf32>
    %cst_51 = arith.constant dense<0.000000e+00> : vector<64x8xf32>
    %37 = tpu.matmul %34, %36, %cst_51 {dimension_numbers = #tpu.dot_dimension_numbers<[1], [0], [0], [1], [0, 0, 1, 1], [], []>} : vector<64x4xf32>, vector<4x8xf32>, vector<64x8xf32> -> vector<64x8xf32>
    %c0_52 = arith.constant 0 : index
    %c0_53 = arith.constant 0 : index
    %38 = vector.load %arg8[%c0_52, %c0_53] : memref<64x8xf32, #tpu.memory_space<vmem>>, vector<64x8xf32>
    %39 = arith.addf %38, %37 : vector<64x8xf32>
    %c0_54 = arith.constant 0 : index
    %c0_55 = arith.constant 0 : index
    %40 = vector.load %arg8[%c0_54, %c0_55] : memref<64x8xf32, #tpu.memory_space<vmem>>, vector<64x8xf32>
    tpu.vector_store %arg8[%c0_54, %c0_55], %39 {strides = array<i32>} : memref<64x8xf32, #tpu.memory_space<vmem>>, vector<64x8xf32>,
    %c1_56 = arith.constant 1 : index
    %c0_57 = arith.constant 0 : index
    %c0_58 = arith.constant 0 : index
    %41 = vector.load %arg7[%c1_56, %c0_57, %c0_58] : memref<10x10x4xf32, #tpu.memory_space<vmem>>, vector<8x8x4xf32>
    %42 = vector.shape_cast %41 : vector<8x8x4xf32> to vector<64x4xf32>
    %c1_59 = arith.constant 1 : index
    %c0_60 = arith.constant 0 : index
    %c0_61 = arith.constant 0 : index
    %c0_62 = arith.constant 0 : index
    %43 = vector.load %arg4[%c1_59, %c0_60, %c0_61, %c0_62] : memref<3x3x4x8xf32, #tpu.memory_space<vmem>>, vector<1x1x4x8xf32>
    %44 = vector.shape_cast %43 : vector<1x1x4x8xf32> to vector<4x8xf32>
    %cst_63 = arith.constant dense<0.000000e+00> : vector<64x8xf32>
    %45 = tpu.matmul %42, %44, %cst_63 {dimension_numbers = #tpu.dot_dimension_numbers<[1], [0], [0], [1], [0, 0, 1, 1], [], []>} : vector<64x4xf32>, vector<4x8xf32>, vector<64x8xf32> -> vector<64x8xf32>
    %c0_64 = arith.constant 0 : index
    %c0_65 = arith.constant 0 : index
    %46 = vector.load %arg8[%c0_64, %c0_65] : memref<64x8xf32, #tpu.memory_space<vmem>>, vector<64x8xf32>
    %47 = arith.addf %46, %45 : vector<64x8xf32>
    %c0_66 = arith.constant 0 : index
    %c0_67 = arith.constant 0 : index
    %48 = vector.load %arg8[%c0_66, %c0_67] : memref<64x8xf32, #tpu.memory_space<vmem>>, vector<64x8xf32>
    tpu.vector_store %arg8[%c0_66, %c0_67], %47 {strides = array<i32>} : memref<64x8xf32, #tpu.memory_space<vmem>>, vector<64x8xf32>,
    %c1_68 = arith.constant 1 : index
    %c1_69 = arith.constant 1 : index
    %c0_70 = arith.constant 0 : index
    %49 = vector.load %arg7[%c1_68, %c1_69, %c0_70] : memref<10x10x4xf32, #tpu.memory_space<vmem>>, vector<8x8x4xf32>
    %50 = vector.shape_cast %49 : vector<8x8x4xf32> to vector<64x4xf32>
    %c1_71 = arith.constant 1 : index
    %c1_72 = arith.constant 1 : index
    %c0_73 = arith.constant 0 : index
    %c0_74 = arith.constant 0 : index
    %51 = vector.load %arg4[%c1_71, %c1_72, %c0_73, %c0_74] : memref<3x3x4x8xf32, #tpu.memory_space<vmem>>, vector<1x1x4x8xf32>
    %52 = vector.shape_cast %51 : vector<1x1x4x8xf32> to vector<4x8xf32>
    %cst_75 = arith.constant dense<0.000000e+00> : vector<64x8xf32>
    %53 = tpu.matmul %50, %52, %cst_75 {dimension_numbers = #tpu.dot_dimension_numbers<[1], [0], [0], [1], [0, 0, 1, 1], [], []>} : vector<64x4xf32>, vector<4x8xf32>, vector<64x8xf32> -> vector<64x8xf32>
    %c0_76 = arith.constant 0 : index
    %c0_77 = arith.constant 0 : index
    %54 = vector.load %arg8[%c0_76, %c0_77] : memref<64x8xf32, #tpu.memory_space<vmem>>, vector<64x8xf32>
    %55 = arith.addf %54, %53 : vector<64x8xf32>
    %c0_78 = arith.constant 0 : index
    %c0_79 = arith.constant 0 : index
    %56 = vector.load %arg8[%c0_78, %c0_79] : memref<64x8xf32, #tpu.memory_space<vmem>>, vector<64x8xf32>
    tpu.vector_store %arg8[%c0_78, %c0_79], %55 {strides = array<i32>} : memref<64x8xf32, #tpu.memory_space<vmem>>, vector<64x8xf32>,
    %c1_80 = arith.constant 1 : index
    %c2_81 = arith.constant 2 : index
    %c0_82 = arith.constant 0 : index
    %57 = vector.load %arg7[%c1_80, %c2_81, %c0_82] : memref<10x10x4xf32, #tpu.memory_space<vmem>>, vector<8x8x4xf32>
    %58 = vector.shape_cast %57 : vector<8x8x4xf32> to vector<64x4xf32>
    %c1_83 = arith.constant 1 : index
    %c2_84 = arith.constant 2 : index
    %c0_85 = arith.constant 0 : index
    %c0_86 = arith.constant 0 : index
    %59 = vector.load %arg4[%c1_83, %c2_84, %c0_85, %c0_86] : memref<3x3x4x8xf32, #tpu.memory_space<vmem>>, vector<1x1x4x8xf32>
    %60 = vector.shape_cast %59 : vector<1x1x4x8xf32> to vector<4x8xf32>
    %cst_87 = arith.constant dense<0.000000e+00> : vector<64x8xf32>
    %61 = tpu.matmul %58, %60, %cst_87 {dimension_numbers = #tpu.dot_dimension_numbers<[1], [0], [0], [1], [0, 0, 1, 1], [], []>} : vector<64x4xf32>, vector<4x8xf32>, vector<64x8xf32> -> vector<64x8xf32>
    %c0_88 = arith.constant 0 : index
    %c0_89 = arith.constant 0 : index
    %62 = vector.load %arg8[%c0_88, %c0_89] : memref<64x8xf32, #tpu.memory_space<vmem>>, vector<64x8xf32>
    %63 = arith.addf %62, %61 : vector<64x8xf32>
    %c0_90 = arith.constant 0 : index
    %c0_91 = arith.constant 0 : index
    %64 = vector.load %arg8[%c0_90, %c0_91] : memref<64x8xf32, #tpu.memory_space<vmem>>, vector<64x8xf32>
    tpu.vector_store %arg8[%c0_90, %c0_91], %63 {strides = array<i32>} : memref<64x8xf32, #tpu.memory_space<vmem>>, vector<64x8xf32>,
    %c2_92 = arith.constant 2 : index
    %c0_93 = arith.constant 0 : index
    %c0_94 = arith.constant 0 : index
    %65 = vector.load %arg7[%c2_92, %c0_93, %c0_94] : memref<10x10x4xf32, #tpu.memory_space<vmem>>, vector<8x8x4xf32>
    %66 = vector.shape_cast %65 : vector<8x8x4xf32> to vector<64x4xf32>
    %c2_95 = arith.constant 2 : index
    %c0_96 = arith.constant 0 : index
    %c0_97 = arith.constant 0 : index
    %c0_98 = arith.constant 0 : index
    %67 = vector.load %arg4[%c2_95, %c0_96, %c0_97, %c0_98] : memref<3x3x4x8xf32, #tpu.memory_space<vmem>>, vector<1x1x4x8xf32>
    %68 = vector.shape_cast %67 : vector<1x1x4x8xf32> to vector<4x8xf32>
    %cst_99 = arith.constant dense<0.000000e+00> : vector<64x8xf32>
    %69 = tpu.matmul %66, %68, %cst_99 {dimension_numbers = #tpu.dot_dimension_numbers<[1], [0], [0], [1], [0, 0, 1, 1], [], []>} : vector<64x4xf32>, vector<4x8xf32>, vector<64x8xf32> -> vector<64x8xf32>
    %c0_100 = arith.constant 0 : index
    %c0_101 = arith.constant 0 : index
    %70 = vector.load %arg8[%c0_100, %c0_101] : memref<64x8xf32, #tpu.memory_space<vmem>>, vector<64x8xf32>
    %71 = arith.addf %70, %69 : vector<64x8xf32>
    %c0_102 = arith.constant 0 : index
    %c0_103 = arith.constant 0 : index
    %72 = vector.load %arg8[%c0_102, %c0_103] : memref<64x8xf32, #tpu.memory_space<vmem>>, vector<64x8xf32>
    tpu.vector_store %arg8[%c0_102, %c0_103], %71 {strides = array<i32>} : memref<64x8xf32, #tpu.memory_space<vmem>>, vector<64x8xf32>,
    %c2_104 = arith.constant 2 : index
    %c1_105 = arith.constant 1 : index
    %c0_106 = arith.constant 0 : index
    %73 = vector.load %arg7[%c2_104, %c1_105, %c0_106] : memref<10x10x4xf32, #tpu.memory_space<vmem>>, vector<8x8x4xf32>
    %74 = vector.shape_cast %73 : vector<8x8x4xf32> to vector<64x4xf32>
    %c2_107 = arith.constant 2 : index
    %c1_108 = arith.constant 1 : index
    %c0_109 = arith.constant 0 : index
    %c0_110 = arith.constant 0 : index
    %75 = vector.load %arg4[%c2_107, %c1_108, %c0_109, %c0_110] : memref<3x3x4x8xf32, #tpu.memory_space<vmem>>, vector<1x1x4x8xf32>
    %76 = vector.shape_cast %75 : vector<1x1x4x8xf32> to vector<4x8xf32>
    %cst_111 = arith.constant dense<0.000000e+00> : vector<64x8xf32>
    %77 = tpu.matmul %74, %76, %cst_111 {dimension_numbers = #tpu.dot_dimension_numbers<[1], [0], [0], [1], [0, 0, 1, 1], [], []>} : vector<64x4xf32>, vector<4x8xf32>, vector<64x8xf32> -> vector<64x8xf32>
    %c0_112 = arith.constant 0 : index
    %c0_113 = arith.constant 0 : index
    %78 = vector.load %arg8[%c0_112, %c0_113] : memref<64x8xf32, #tpu.memory_space<vmem>>, vector<64x8xf32>
    %79 = arith.addf %78, %77 : vector<64x8xf32>
    %c0_114 = arith.constant 0 : index
    %c0_115 = arith.constant 0 : index
    %80 = vector.load %arg8[%c0_114, %c0_115] : memref<64x8xf32, #tpu.memory_space<vmem>>, vector<64x8xf32>
    tpu.vector_store %arg8[%c0_114, %c0_115], %79 {strides = array<i32>} : memref<64x8xf32, #tpu.memory_space<vmem>>, vector<64x8xf32>,
    %c2_116 = arith.constant 2 : index
    %c2_117 = arith.constant 2 : index
    %c0_118 = arith.constant 0 : index
    %81 = vector.load %arg7[%c2_116, %c2_117, %c0_118] : memref<10x10x4xf32, #tpu.memory_space<vmem>>, vector<8x8x4xf32>
    %82 = vector.shape_cast %81 : vector<8x8x4xf32> to vector<64x4xf32>
    %c2_119 = arith.constant 2 : index
    %c2_120 = arith.constant 2 : index
    %c0_121 = arith.constant 0 : index
    %c0_122 = arith.constant 0 : index
    %83 = vector.load %arg4[%c2_119, %c2_120, %c0_121, %c0_122] : memref<3x3x4x8xf32, #tpu.memory_space<vmem>>, vector<1x1x4x8xf32>
    %84 = vector.shape_cast %83 : vector<1x1x4x8xf32> to vector<4x8xf32>
    %cst_123 = arith.constant dense<0.000000e+00> : vector<64x8xf32>
    %85 = tpu.matmul %82, %84, %cst_123 {dimension_numbers = #tpu.dot_dimension_numbers<[1], [0], [0], [1], [0, 0, 1, 1], [], []>} : vector<64x4xf32>, vector<4x8xf32>, vector<64x8xf32> -> vector<64x8xf32>
    %c0_124 = arith.constant 0 : index
    %c0_125 = arith.constant 0 : index
    %86 = vector.load %arg8[%c0_124, %c0_125] : memref<64x8xf32, #tpu.memory_space<vmem>>, vector<64x8xf32>
    %87 = arith.addf %86, %85 : vector<64x8xf32>
    %c0_126 = arith.constant 0 : index
    %c0_127 = arith.constant 0 : index
    %88 = vector.load %arg8[%c0_126, %c0_127] : memref<64x8xf32, #tpu.memory_space<vmem>>, vector<64x8xf32>
    tpu.vector_store %arg8[%c0_126, %c0_127], %87 {strides = array<i32>} : memref<64x8xf32, #tpu.memory_space<vmem>>, vector<64x8xf32>,
    %c0_128 = arith.constant 0 : index
    %c0_129 = arith.constant 0 : index
    %89 = vector.load %arg8[%c0_128, %c0_129] : memref<64x8xf32, #tpu.memory_space<vmem>>, vector<64x8xf32>
    %c0_130 = arith.constant 0 : index
    %c0_131 = arith.constant 0 : index
    %90 = vector.load %arg5[%c0_130, %c0_131] : memref<1x8xf32, #tpu.memory_space<vmem>>, vector<1x8xf32>
    %91 = vector.broadcast %90 : vector<1x8xf32> to vector<64x8xf32>
    %92 = arith.addf %89, %91 : vector<64x8xf32>
    %cst_132 = arith.constant 0.000000e+00 : f32
    %93 = vector.broadcast %cst_132 : f32 to vector<64x8xf32>
    %94 = arith.maximumf %92, %93 : vector<64x8xf32>
    %95 = vector.shape_cast %94 : vector<64x8xf32> to vector<8x8x8xf32>
    %c0_133 = arith.constant 0 : index
    %c0_134 = arith.constant 0 : index
    %c0_135 = arith.constant 0 : index
    %c0_136 = arith.constant 0 : index
    %96 = vector.load %arg6[%c0_133, %c0_134, %c0_135, %c0_136] : memref<1x8x8x8xf32, #tpu.memory_space<vmem>>, vector<1x8x8x8xf32>
    %97 = vector.shape_cast %96 : vector<1x8x8x8xf32> to vector<8x8x8xf32>
    %98 = vector.shape_cast %95 : vector<8x8x8xf32> to vector<1x8x8x8xf32>
    tpu.vector_store %arg6[%c0_133, %c0_134, %c0_135, %c0_136], %98 {strides = array<i32>} : memref<1x8x8x8xf32, #tpu.memory_space<vmem>>, vector<1x8x8x8xf32>,
    return
  }
  func.func @transform_0(%arg0: i32) -> (i32, i32, i32, i32) {
    %c0_i32 = arith.constant 0 : i32
    %c0_i32_0 = arith.constant 0 : i32
    %c0_i32_1 = arith.constant 0 : i32
    %c0_i32_2 = arith.constant 0 : i32
    return %arg0, %c0_i32, %c0_i32_0, %c0_i32_1 : i32, i32, i32, i32
  }
  func.func @transform_1(%arg0: i32) -> (i32, i32) {
    %c0_i32 = arith.constant 0 : i32
    %c0_i32_0 = arith.constant 0 : i32
    %c0_i32_1 = arith.constant 0 : i32
    return %c0_i32, %c0_i32_0 : i32, i32
  }
  func.func @transform_2(%arg0: i32) -> (i32, i32) {
    %c0_i32 = arith.constant 0 : i32
    %c0_i32_0 = arith.constant 0 : i32
    %c0_i32_1 = arith.constant 0 : i32
    return %c0_i32, %c0_i32_0 : i32, i32
  }
  func.func @transform_3(%arg0: i32) -> (i32, i32, i32, i32) {
    %c0_i32 = arith.constant 0 : i32
    %c0_i32_0 = arith.constant 0 : i32
    %c0_i32_1 = arith.constant 0 : i32
    %c0_i32_2 = arith.constant 0 : i32
    %c0_i32_3 = arith.constant 0 : i32
    return %c0_i32, %c0_i32_0, %c0_i32_1, %c0_i32_2 : i32, i32, i32, i32
  }
  func.func @transform_4(%arg0: i32) -> (i32, i32) {
    %c0_i32 = arith.constant 0 : i32
    %c0_i32_0 = arith.constant 0 : i32
    %c0_i32_1 = arith.constant 0 : i32
    return %c0_i32, %c0_i32_0 : i32, i32
  }
  func.func @transform_5(%arg0: i32) -> (i32, i32, i32, i32) {
    %c0_i32 = arith.constant 0 : i32
    %c0_i32_0 = arith.constant 0 : i32
    %c0_i32_1 = arith.constant 0 : i32
    %c0_i32_2 = arith.constant 0 : i32
    return %arg0, %c0_i32, %c0_i32_0, %c0_i32_1 : i32, i32, i32, i32
  }
}

</mosaic_0001>

<bundles_post_ra>
// kernel: ratio_forward.3
= control target key start
LH: loop header
LB: loop body
LE: loop exit
PB: predicated region body
PF: predicated region fallthrough
CT: control target
= control target key end

     0   :  { %vm12_vm0 = vcmask 25600   ;;  %vm79_vm1 = vcmask 31744   ;;  %v421_v0 = vmov 0.0   ;;  %vm214_vm2 = vcmask 24576   ;;  %s767_s0 = inlined_call_operand.vmem [shape: f32[512,4], index: 0, kind: input, shape index: {}]   ;;  %s768_s1 = inlined_call_operand.vmem [shape: f32[2,4], index: 1, kind: output, shape index: {}]  }
   0x1   :  { %13 = vst.msk [vmem:[%s768_s1] sm:$0x3] %vm12_vm0, %v421_v0  ;;  %v14_v1 = vld [vmem:[%s767_s0] sm:$0xff]  ;;  %v15_v2 = vld [vmem:[%s767_s0 + $0x8] sm:$0xff]  ;;  %v16_v3 = vld [vmem:[%s767_s0 + $0x10] sm:$0xff] }
   0x2   :  { %v80_v4 = vsel %vm79_vm1, %v14_v1, 0.0  ;;  %v81_v5 = vsel %vm79_vm1, %v15_v2, 0.0  ;;  %v83_v6 = vsel %vm79_vm1, %v16_v3, 0.0  ;;  %v17_v7 = vld [vmem:[%s767_s0 + $0x18] sm:$0xff]  ;;  %v18_v10 = vld [vmem:[%s767_s0 + $0x20] sm:$0xff]  ;;  %v19_v13 = vld [vmem:[%s767_s0 + $0x28] sm:$0xff]  ;;  %v217_v21 = vmul.f32 %v14_v1, %v14_v1 }
   0x3   :  { %v82_v8 = vadd.f32 %v81_v5, %v80_v4  ;;  %v85_v9 = vsel %vm79_vm1, %v17_v7, 0.0  ;;  %v87_v12 = vsel %vm79_vm1, %v18_v10, 0.0  ;;  %v89_v15 = vsel %vm79_vm1, %v19_v13, 0.0  ;;  %v20_v16 = vld [vmem:[%s767_s0 + $0x30] sm:$0xff]  ;;  %v21_v19 = vld [vmem:[%s767_s0 + $0x38] sm:$0xff]  ;;  %v22_v25 = vld [vmem:[%s767_s0 + $0x40] sm:$0xff] }
   0x4   :  { %v91_v18 = vsel %vm79_vm1, %v20_v16, 0.0  ;;  %v93_v22 = vsel %vm79_vm1, %v21_v19, 0.0  ;;  %v218_v23 = vmul.f32 %v15_v2, %v15_v2  ;;  %v219_v24 = vmul.f32 %v16_v3, %v16_v3  ;;  %v23_v29 = vld [vmem:[%s767_s0 + $0x48] sm:$0xff]  ;;  %v24_v36 = vld [vmem:[%s767_s0 + $0x50] sm:$0xff]  ;;  %v25_v42 = vld [vmem:[%s767_s0 + $0x58] sm:$0xff] }
   0x5   :  { %v84_v11 = vadd.f32 %v83_v6, %v82_v8  ;;  %v95_v27 = vsel %vm79_vm1, %v22_v25, 0.0  ;;  %v220_v28 = vmul.f32 %v17_v7, %v17_v7  ;;  %v281_v31 = vsel %vm79_vm1, %v217_v21, 0.0  ;;  %v26_v48 = vld [vmem:[%s767_s0 + $0x60] sm:$0xff]  ;;  %v27_v54 = vld [vmem:[%s767_s0 + $0x68] sm:$0xff]  ;;  %v28_v60 = vld [vmem:[%s767_s0 + $0x70] sm:$0xff] }
   0x6   :  { %v97_v32 = vsel %vm79_vm1, %v23_v29, 0.0  ;;  %v221_v33 = vmul.f32 %v18_v10, %v18_v10  ;;  %v282_v34 = vsel %vm79_vm1, %v218_v23, 0.0  ;;  %v284_v35 = vsel %vm79_vm1, %v219_v24, 0.0  ;;  %v29_v2 = vld [vmem:[%s767_s0 + $0x78] sm:$0xff]  ;;  %v30_v8 = vld [vmem:[%s767_s0 + $0x80] sm:$0xff] }
   0x7   :  { %v86_v14 = vadd.f32 %v85_v9, %v84_v11  ;;  %v283_v38 = vadd.f32 %v282_v34, %v281_v31  ;;  %v99_v39 = vsel %vm79_vm1, %v24_v36, 0.0  ;;  %v222_v40 = vmul.f32 %v19_v13, %v19_v13 }
   0x8   :  { %v286_v41 = vsel %vm79_vm1, %v220_v28, 0.0  ;;  %v101_v45 = vsel %vm79_vm1, %v25_v42, 0.0  ;;  %v223_v46 = vmul.f32 %v20_v16, %v20_v16  ;;  %v288_v47 = vsel %vm79_vm1, %v221_v33, 0.0 }
   0x9   :  { %v88_v17 = vadd.f32 %v87_v12, %v86_v14  ;;  %v285_v44 = vadd.f32 %v284_v35, %v283_v38  ;;  %v103_v51 = vsel %vm79_vm1, %v26_v48, 0.0  ;;  %v224_v52 = vmul.f32 %v21_v19, %v21_v19  ;;  %v31_v14 = vld [vmem:[%s767_s0 + $0x88] sm:$0xff] }
   0xa   :  { %v290_v53 = vsel %vm79_vm1, %v222_v40, 0.0  ;;  %v105_v57 = vsel %vm79_vm1, %v27_v54, 0.0  ;;  %v225_v58 = vmul.f32 %v22_v25, %v22_v25  ;;  %v292_v59 = vsel %vm79_vm1, %v223_v46, 0.0  ;;  %v35_v38 = vld [vmem:[%s767_s0 + $0xa8] sm:$0xff] }
   0xb   :  { %v90_v20 = vadd.f32 %v89_v15, %v88_v17  ;;  %v287_v50 = vadd.f32 %v286_v41, %v285_v44  ;;  %v107_v63 = vsel %vm79_vm1, %v28_v60, 0.0  ;;  %v226_v0 = vmul.f32 %v23_v29, %v23_v29  ;;  %v36_v44 = vld [vmem:[%s767_s0 + $0xb0] sm:$0xff] }
   0xc   :  { %v294_v1 = vsel %vm79_vm1, %v224_v52, 0.0  ;;  %v109_v5 = vsel %vm79_vm1, %v29_v2, 0.0  ;;  %v227_v6 = vmul.f32 %v24_v36, %v24_v36  ;;  %v296_v7 = vsel %vm79_vm1, %v225_v58, 0.0 }
   0xd   :  { %v92_v26 = vadd.f32 %v91_v18, %v90_v20  ;;  %v289_v56 = vadd.f32 %v288_v47, %v287_v50  ;;  %v111_v11 = vsel %vm79_vm1, %v30_v8, 0.0  ;;  %v228_v12 = vmul.f32 %v25_v42, %v25_v42  ;;  %v32_v20 = vld [vmem:[%s767_s0 + $0x90] sm:$0xff]  ;;  %v37_v50 = vld [vmem:[%s767_s0 + $0xb8] sm:$0xff] }
   0xe   :  { %v298_v13 = vsel %vm79_vm1, %v226_v0, 0.0  ;;  %v113_v17 = vsel %vm79_vm1, %v31_v14, 0.0  ;;  %v229_v18 = vmul.f32 %v26_v48, %v26_v48  ;;  %v300_v19 = vsel %vm79_vm1, %v227_v6, 0.0 }
   0xf   :  { %v94_v30 = vadd.f32 %v93_v22, %v92_v26  ;;  %v291_v62 = vadd.f32 %v290_v53, %v289_v56  ;;  %v115_v23 = vsel %vm79_vm1, %v32_v20, 0.0  ;;  %v230_v24 = vmul.f32 %v27_v54, %v27_v54  ;;  %v33_v26 = vld [vmem:[%s767_s0 + $0x98] sm:$0xff]  ;;  %v38_v56 = vld [vmem:[%s767_s0 + $0xc0] sm:$0xff] }
  0x10   :  { %v302_v25 = vsel %vm79_vm1, %v228_v12, 0.0  ;;  %v117_v29 = vsel %vm79_vm1, %v33_v26, 0.0  ;;  %v304_v31 = vsel %vm79_vm1, %v229_v18, 0.0  ;;  %v232_v36 = vmul.f32 %v29_v2, %v29_v2 }
  0x11   :  { %v96_v37 = vadd.f32 %v95_v27, %v94_v30  ;;  %v293_v4 = vadd.f32 %v292_v59, %v291_v62  ;;  %v231_v30 = vmul.f32 %v28_v60, %v28_v60  ;;  %v121_v41 = vsel %vm79_vm1, %v35_v38, 0.0  ;;  %v39_v62 = vld [vmem:[%s767_s0 + $0xc8] sm:$0xff] }
  0x12   :  { %v233_v42 = vmul.f32 %v30_v8, %v30_v8  ;;  %v123_v47 = vsel %vm79_vm1, %v36_v44, 0.0  ;;  %v234_v48 = vmul.f32 %v31_v14, %v31_v14  ;;  %v125_v53 = vsel %vm79_vm1, %v37_v50, 0.0 }
  0x13   :  { %v98_v43 = vadd.f32 %v97_v32, %v96_v37  ;;  %v295_v10 = vadd.f32 %v294_v1, %v293_v4  ;;  %v34_v32 = vld [vmem:[%s767_s0 + $0xa0] sm:$0xff]  ;;  %v306_v37 = vsel %vm79_vm1, %v230_v24, 0.0  ;;  %v235_v54 = vmul.f32 %v32_v20, %v32_v20  ;;  %v40_v4 = vld [vmem:[%s767_s0 + $0xd0] sm:$0xff] }
  0x14   :  { %v119_v35 = vsel %vm79_vm1, %v34_v32, 0.0  ;;  %v127_v59 = vsel %vm79_vm1, %v38_v56, 0.0  ;;  %v236_v60 = vmul.f32 %v33_v26, %v33_v26  ;;  %v129_v1 = vsel %vm79_vm1, %v39_v62, 0.0 }
  0x15   :  { %v100_v49 = vadd.f32 %v99_v39, %v98_v43  ;;  %v297_v16 = vadd.f32 %v296_v7, %v295_v10  ;;  %v308_v43 = vsel %vm79_vm1, %v231_v30, 0.0  ;;  %v237_v2 = vmul.f32 %v34_v32, %v34_v32  ;;  %v41_v10 = vld [vmem:[%s767_s0 + $0xd8] sm:$0xff] }
  0x16   :  { %v131_v7 = vsel %vm79_vm1, %v40_v4, 0.0  ;;  %v238_v8 = vmul.f32 %v35_v38, %v35_v38  ;;  %v239_v14 = vmul.f32 %v36_v44, %v36_v44  ;;  %v240_v20 = vmul.f32 %v37_v50, %v37_v50 }
  0x17   :  { %v102_v55 = vadd.f32 %v101_v45, %v100_v49  ;;  %v299_v22 = vadd.f32 %v298_v13, %v297_v16  ;;  %v310_v49 = vsel %vm79_vm1, %v232_v36, 0.0  ;;  %v133_v13 = vsel %vm79_vm1, %v41_v10, 0.0  ;;  %v42_v16 = vld [vmem:[%s767_s0 + $0xe0] sm:$0xff] }
  0x18   :  { %v241_v26 = vmul.f32 %v38_v56, %v38_v56  ;;  %v242_v32 = vmul.f32 %v39_v62, %v39_v62  ;;  %v243_v38 = vmul.f32 %v40_v4, %v40_v4  ;;  %v244_v44 = vmul.f32 %v41_v10, %v41_v10 }
  0x19   :  { %v104_v61 = vadd.f32 %v103_v51, %v102_v55  ;;  %v301_v28 = vadd.f32 %v300_v19, %v299_v22  ;;  %v312_v55 = vsel %vm79_vm1, %v233_v42, 0.0  ;;  %v135_v19 = vsel %vm79_vm1, %v42_v16, 0.0  ;;  %v43_v22 = vld [vmem:[%s767_s0 + $0xe8] sm:$0xff] }
  0x1a   :  { %v245_v50 = vmul.f32 %v42_v16, %v42_v16  ;;  %v246_v56 = vmul.f32 %v43_v22, %v43_v22 }
  0x1b   :  { %v106_v3 = vadd.f32 %v105_v57, %v104_v61  ;;  %v303_v34 = vadd.f32 %v302_v25, %v301_v28  ;;  %v314_v61 = vsel %vm79_vm1, %v234_v48, 0.0  ;;  %v137_v25 = vsel %vm79_vm1, %v43_v22, 0.0  ;;  %v44_v28 = vld [vmem:[%s767_s0 + $0xf0] sm:$0xff] }
  0x1c   :  { %v247_v62 = vmul.f32 %v44_v28, %v44_v28 }
  0x1d   :  { %v108_v9 = vadd.f32 %v107_v63, %v106_v3  ;;  %v305_v40 = vadd.f32 %v304_v31, %v303_v34  ;;  %v316_v3 = vsel %vm79_vm1, %v235_v54, 0.0  ;;  %v139_v31 = vsel %vm79_vm1, %v44_v28, 0.0  ;;  %v45_v34 = vld [vmem:[%s767_s0 + $0xf8] sm:$0xff] }
  0x1e   :  { %v248_v4 = vmul.f32 %v45_v34, %v45_v34 }
  0x1f   :  { %v110_v15 = vadd.f32 %v109_v5, %v108_v9  ;;  %v307_v46 = vadd.f32 %v306_v37, %v305_v40  ;;  %v318_v9 = vsel %vm79_vm1, %v236_v60, 0.0  ;;  %v141_v37 = vsel %vm79_vm1, %v45_v34, 0.0  ;;  %v46_v40 = vld [vmem:[%s767_s0 + $0x100] sm:$0xff] }
  0x20   :  { %v249_v10 = vmul.f32 %v46_v40, %v46_v40 }
  0x21   :  { %v112_v21 = vadd.f32 %v111_v11, %v110_v15  ;;  %v309_v52 = vadd.f32 %v308_v43, %v307_v46  ;;  %v320_v15 = vsel %vm79_vm1, %v237_v2, 0.0  ;;  %v143_v43 = vsel %vm79_vm1, %v46_v40, 0.0  ;;  %v47_v46 = vld [vmem:[%s767_s0 + $0x108] sm:$0xff] }
  0x22   :  { %v250_v16 = vmul.f32 %v47_v46, %v47_v46 }
  0x23   :  { %v114_v27 = vadd.f32 %v113_v17, %v112_v21  ;;  %v311_v58 = vadd.f32 %v310_v49, %v309_v52  ;;  %v322_v21 = vsel %vm79_vm1, %v238_v8, 0.0  ;;  %v145_v49 = vsel %vm79_vm1, %v47_v46, 0.0  ;;  %v48_v52 = vld [vmem:[%s767_s0 + $0x110] sm:$0xff] }
  0x24   :  { %v251_v22 = vmul.f32 %v48_v52, %v48_v52 }
  0x25   :  { %v116_v33 = vadd.f32 %v115_v23, %v114_v27  ;;  %v313_v0 = vadd.f32 %v312_v55, %v311_v58  ;;  %v324_v27 = vsel %vm79_vm1, %v239_v14, 0.0  ;;  %v147_v55 = vsel %vm79_vm1, %v48_v52, 0.0  ;;  %v49_v58 = vld [vmem:[%s767_s0 + $0x118] sm:$0xff] }
  0x26   :  { %v252_v28 = vmul.f32 %v49_v58, %v49_v58 }
  0x27   :  { %v118_v39 = vadd.f32 %v117_v29, %v116_v33  ;;  %v315_v6 = vadd.f32 %v314_v61, %v313_v0  ;;  %v326_v33 = vsel %vm79_vm1, %v240_v20, 0.0  ;;  %v149_v61 = vsel %vm79_vm1, %v49_v58, 0.0  ;;  %v50_v0 = vld [vmem:[%s767_s0 + $0x120] sm:$0xff] }
  0x28   :  { %v253_v34 = vmul.f32 %v50_v0, %v50_v0 }
  0x29   :  { %v120_v45 = vadd.f32 %v119_v35, %v118_v39  ;;  %v317_v12 = vadd.f32 %v316_v3, %v315_v6  ;;  %v328_v39 = vsel %vm79_vm1, %v241_v26, 0.0  ;;  %v151_v3 = vsel %vm79_vm1, %v50_v0, 0.0  ;;  %v51_v6 = vld [vmem:[%s767_s0 + $0x128] sm:$0xff] }
  0x2a   :  { %v254_v40 = vmul.f32 %v51_v6, %v51_v6 }
  0x2b   :  { %v122_v51 = vadd.f32 %v121_v41, %v120_v45  ;;  %v319_v18 = vadd.f32 %v318_v9, %v317_v12  ;;  %v330_v45 = vsel %vm79_vm1, %v242_v32, 0.0  ;;  %v153_v9 = vsel %vm79_vm1, %v51_v6, 0.0  ;;  %v52_v12 = vld [vmem:[%s767_s0 + $0x130] sm:$0xff] }
  0x2c   :  { %v255_v46 = vmul.f32 %v52_v12, %v52_v12 }
  0x2d   :  { %v124_v57 = vadd.f32 %v123_v47, %v122_v51  ;;  %v321_v24 = vadd.f32 %v320_v15, %v319_v18  ;;  %v332_v51 = vsel %vm79_vm1, %v243_v38, 0.0  ;;  %v155_v15 = vsel %vm79_vm1, %v52_v12, 0.0  ;;  %v53_v18 = vld [vmem:[%s767_s0 + $0x138] sm:$0xff] }
  0x2e   :  { %v256_v52 = vmul.f32 %v53_v18, %v53_v18 }
  0x2f   :  { %v126_v63 = vadd.f32 %v125_v53, %v124_v57  ;;  %v323_v30 = vadd.f32 %v322_v21, %v321_v24  ;;  %v334_v57 = vsel %vm79_vm1, %v244_v44, 0.0  ;;  %v157_v21 = vsel %vm79_vm1, %v53_v18, 0.0  ;;  %v54_v24 = vld [vmem:[%s767_s0 + $0x140] sm:$0xff] }
  0x30   :  { %v257_v58 = vmul.f32 %v54_v24, %v54_v24 }
  0x31   :  { %v128_v5 = vadd.f32 %v127_v59, %v126_v63  ;;  %v325_v36 = vadd.f32 %v324_v27, %v323_v30  ;;  %v336_v63 = vsel %vm79_vm1, %v245_v50, 0.0  ;;  %v159_v27 = vsel %vm79_vm1, %v54_v24, 0.0  ;;  %v55_v30 = vld [vmem:[%s767_s0 + $0x148] sm:$0xff] }
  0x32   :  { %v258_v0 = vmul.f32 %v55_v30, %v55_v30 }
  0x33   :  { %v130_v11 = vadd.f32 %v129_v1, %v128_v5  ;;  %v327_v42 = vadd.f32 %v326_v33, %v325_v36  ;;  %v338_v5 = vsel %vm79_vm1, %v246_v56, 0.0  ;;  %v161_v33 = vsel %vm79_vm1, %v55_v30, 0.0  ;;  %v56_v36 = vld [vmem:[%s767_s0 + $0x150] sm:$0xff] }
  0x34   :  { %v259_v6 = vmul.f32 %v56_v36, %v56_v36 }
  0x35   :  { %v132_v17 = vadd.f32 %v131_v7, %v130_v11  ;;  %v329_v48 = vadd.f32 %v328_v39, %v327_v42  ;;  %v340_v11 = vsel %vm79_vm1, %v247_v62, 0.0  ;;  %v163_v39 = vsel %vm79_vm1, %v56_v36, 0.0  ;;  %v57_v42 = vld [vmem:[%s767_s0 + $0x158] sm:$0xff] }
  0x36   :  { %v260_v12 = vmul.f32 %v57_v42, %v57_v42 }
  0x37   :  { %v134_v23 = vadd.f32 %v133_v13, %v132_v17  ;;  %v331_v54 = vadd.f32 %v330_v45, %v329_v48  ;;  %v342_v17 = vsel %vm79_vm1, %v248_v4, 0.0  ;;  %v165_v45 = vsel %vm79_vm1, %v57_v42, 0.0  ;;  %v58_v48 = vld [vmem:[%s767_s0 + $0x160] sm:$0xff] }
  0x38   :  { %v261_v18 = vmul.f32 %v58_v48, %v58_v48 }
  0x39   :  { %v136_v29 = vadd.f32 %v135_v19, %v134_v23  ;;  %v333_v60 = vadd.f32 %v332_v51, %v331_v54  ;;  %v344_v23 = vsel %vm79_vm1, %v249_v10, 0.0  ;;  %v167_v51 = vsel %vm79_vm1, %v58_v48, 0.0  ;;  %v59_v54 = vld [vmem:[%s767_s0 + $0x168] sm:$0xff] }
  0x3a   :  { %v262_v24 = vmul.f32 %v59_v54, %v59_v54 }
  0x3b   :  { %v138_v35 = vadd.f32 %v137_v25, %v136_v29  ;;  %v335_v2 = vadd.f32 %v334_v57, %v333_v60  ;;  %v346_v29 = vsel %vm79_vm1, %v250_v16, 0.0  ;;  %v169_v57 = vsel %vm79_vm1, %v59_v54, 0.0  ;;  %v60_v60 = vld [vmem:[%s767_s0 + $0x170] sm:$0xff] }
  0x3c   :  { %v263_v30 = vmul.f32 %v60_v60, %v60_v60 }
  0x3d   :  { %v140_v41 = vadd.f32 %v139_v31, %v138_v35  ;;  %v337_v8 = vadd.f32 %v336_v63, %v335_v2  ;;  %v348_v35 = vsel %vm79_vm1, %v251_v22, 0.0  ;;  %v171_v63 = vsel %vm79_vm1, %v60_v60, 0.0  ;;  %v61_v2 = vld [vmem:[%s767_s0 + $0x178] sm:$0xff] }
  0x3e   :  { %v264_v36 = vmul.f32 %v61_v2, %v61_v2 }
  0x3f   :  { %v142_v47 = vadd.f32 %v141_v37, %v140_v41  ;;  %v339_v14 = vadd.f32 %v338_v5, %v337_v8  ;;  %v350_v41 = vsel %vm79_vm1, %v252_v28, 0.0  ;;  %v173_v5 = vsel %vm79_vm1, %v61_v2, 0.0  ;;  %v62_v8 = vld [vmem:[%s767_s0 + $0x180] sm:$0xff] }
  0x40   :  { %v265_v42 = vmul.f32 %v62_v8, %v62_v8 }
  0x41   :  { %v144_v53 = vadd.f32 %v143_v43, %v142_v47  ;;  %v341_v20 = vadd.f32 %v340_v11, %v339_v14  ;;  %v352_v47 = vsel %vm79_vm1, %v253_v34, 0.0  ;;  %v175_v11 = vsel %vm79_vm1, %v62_v8, 0.0  ;;  %v63_v14 = vld [vmem:[%s767_s0 + $0x188] sm:$0xff] }
  0x42   :  { %v266_v48 = vmul.f32 %v63_v14, %v63_v14 }
  0x43   :  { %v146_v59 = vadd.f32 %v145_v49, %v144_v53  ;;  %v343_v26 = vadd.f32 %v342_v17, %v341_v20  ;;  %v354_v53 = vsel %vm79_vm1, %v254_v40, 0.0  ;;  %v177_v17 = vsel %vm79_vm1, %v63_v14, 0.0  ;;  %v64_v20 = vld [vmem:[%s767_s0 + $0x190] sm:$0xff] }
  0x44   :  { %v267_v54 = vmul.f32 %v64_v20, %v64_v20 }
  0x45   :  { %v148_v1 = vadd.f32 %v147_v55, %v146_v59  ;;  %v345_v32 = vadd.f32 %v344_v23, %v343_v26  ;;  %v356_v59 = vsel %vm79_vm1, %v255_v46, 0.0  ;;  %v179_v23 = vsel %vm79_vm1, %v64_v20, 0.0  ;;  %v65_v26 = vld [vmem:[%s767_s0 + $0x198] sm:$0xff] }
  0x46   :  { %v268_v60 = vmul.f32 %v65_v26, %v65_v26 }
  0x47   :  { %v150_v7 = vadd.f32 %v149_v61, %v148_v1  ;;  %v347_v38 = vadd.f32 %v346_v29, %v345_v32  ;;  %v358_v1 = vsel %vm79_vm1, %v256_v52, 0.0  ;;  %v181_v29 = vsel %vm79_vm1, %v65_v26, 0.0  ;;  %v66_v32 = vld [vmem:[%s767_s0 + $0x1a0] sm:$0xff] }
  0x48   :  { %v269_v2 = vmul.f32 %v66_v32, %v66_v32 }
  0x49   :  { %v152_v13 = vadd.f32 %v151_v3, %v150_v7  ;;  %v349_v44 = vadd.f32 %v348_v35, %v347_v38  ;;  %v360_v7 = vsel %vm79_vm1, %v257_v58, 0.0  ;;  %v183_v35 = vsel %vm79_vm1, %v66_v32, 0.0  ;;  %v67_v38 = vld [vmem:[%s767_s0 + $0x1a8] sm:$0xff] }
  0x4a   :  { %v270_v8 = vmul.f32 %v67_v38, %v67_v38 }
  0x4b   :  { %v154_v19 = vadd.f32 %v153_v9, %v152_v13  ;;  %v351_v50 = vadd.f32 %v350_v41, %v349_v44  ;;  %v362_v13 = vsel %vm79_vm1, %v258_v0, 0.0  ;;  %v185_v41 = vsel %vm79_vm1, %v67_v38, 0.0  ;;  %v68_v44 = vld [vmem:[%s767_s0 + $0x1b0] sm:$0xff] }
  0x4c   :  { %v271_v14 = vmul.f32 %v68_v44, %v68_v44 }
  0x4d   :  { %v156_v25 = vadd.f32 %v155_v15, %v154_v19  ;;  %v353_v56 = vadd.f32 %v352_v47, %v351_v50  ;;  %v364_v19 = vsel %vm79_vm1, %v259_v6, 0.0  ;;  %v187_v47 = vsel %vm79_vm1, %v68_v44, 0.0  ;;  %v69_v50 = vld [vmem:[%s767_s0 + $0x1b8] sm:$0xff] }
  0x4e   :  { %v272_v20 = vmul.f32 %v69_v50, %v69_v50 }
  0x4f   :  { %v158_v31 = vadd.f32 %v157_v21, %v156_v25  ;;  %v355_v62 = vadd.f32 %v354_v53, %v353_v56  ;;  %v366_v25 = vsel %vm79_vm1, %v260_v12, 0.0  ;;  %v189_v53 = vsel %vm79_vm1, %v69_v50, 0.0  ;;  %v70_v56 = vld [vmem:[%s767_s0 + $0x1c0] sm:$0xff] }
  0x50   :  { %v273_v26 = vmul.f32 %v70_v56, %v70_v56 }
  0x51   :  { %v160_v37 = vadd.f32 %v159_v27, %v158_v31  ;;  %v357_v4 = vadd.f32 %v356_v59, %v355_v62  ;;  %v368_v31 = vsel %vm79_vm1, %v261_v18, 0.0  ;;  %v191_v59 = vsel %vm79_vm1, %v70_v56, 0.0  ;;  %v71_v62 = vld [vmem:[%s767_s0 + $0x1c8] sm:$0xff] }
  0x52   :  { %v274_v32 = vmul.f32 %v71_v62, %v71_v62 }
  0x53   :  { %v162_v43 = vadd.f32 %v161_v33, %v160_v37  ;;  %v359_v10 = vadd.f32 %v358_v1, %v357_v4  ;;  %v370_v37 = vsel %vm79_vm1, %v262_v24, 0.0  ;;  %v193_v1 = vsel %vm79_vm1, %v71_v62, 0.0  ;;  %v72_v4 = vld [vmem:[%s767_s0 + $0x1d0] sm:$0xff] }
  0x54   :  { %v275_v38 = vmul.f32 %v72_v4, %v72_v4 }
  0x55   :  { %v164_v49 = vadd.f32 %v163_v39, %v162_v43  ;;  %v361_v16 = vadd.f32 %v360_v7, %v359_v10  ;;  %v372_v43 = vsel %vm79_vm1, %v263_v30, 0.0  ;;  %v195_v7 = vsel %vm79_vm1, %v72_v4, 0.0  ;;  %v73_v10 = vld [vmem:[%s767_s0 + $0x1d8] sm:$0xff] }
  0x57   :  { %v166_v55 = vadd.f32 %v165_v45, %v164_v49  ;;  %v363_v22 = vadd.f32 %v362_v13, %v361_v16  ;;  %v374_v49 = vsel %vm79_vm1, %v264_v36, 0.0  ;;  %v197_v13 = vsel %vm79_vm1, %v73_v10, 0.0  ;;  %v74_v16 = vld [vmem:[%s767_s0 + $0x1e0] sm:$0xff] }
  0x59   :  { %v168_v61 = vadd.f32 %v167_v51, %v166_v55  ;;  %v365_v28 = vadd.f32 %v364_v19, %v363_v22  ;;  %v376_v55 = vsel %vm79_vm1, %v265_v42, 0.0  ;;  %v199_v19 = vsel %vm79_vm1, %v74_v16, 0.0  ;;  %v75_v22 = vld [vmem:[%s767_s0 + $0x1e8] sm:$0xff] }
  0x5a   :  { %v276_v42 = vmul.f32 %v73_v10, %v73_v10  ;;  %v278_v50 = vmul.f32 %v75_v22, %v75_v22 }
  0x5b   :  { %v170_v3 = vadd.f32 %v169_v57, %v168_v61  ;;  %v367_v34 = vadd.f32 %v366_v25, %v365_v28  ;;  %v378_v61 = vsel %vm79_vm1, %v266_v48, 0.0  ;;  %v201_v25 = vsel %vm79_vm1, %v75_v22, 0.0  ;;  %v76_v28 = vld [vmem:[%s767_s0 + $0x1f0] sm:$0xff] }
  0x5d   :  { %v172_v9 = vadd.f32 %v171_v63, %v170_v3  ;;  %v369_v40 = vadd.f32 %v368_v31, %v367_v34  ;;  %v380_v3 = vsel %vm79_vm1, %v267_v54, 0.0  ;;  %v203_v31 = vsel %vm79_vm1, %v76_v28, 0.0  ;;  %v77_v34 = vld [vmem:[%s767_s0 + $0x1f8] sm:$0xff] }
  0x5e   :  { %v279_v54 = vmul.f32 %v76_v28, %v76_v28 }
  0x5f   :  { %v174_v15 = vadd.f32 %v173_v5, %v172_v9  ;;  %v371_v46 = vadd.f32 %v370_v37, %v369_v40  ;;  %v382_v9 = vsel %vm79_vm1, %v268_v60, 0.0  ;;  %v205_v37 = vsel %vm79_vm1, %v77_v34, 0.0 }
  0x60   :  { %v404_v62 = vsel %vm79_vm1, %v279_v54, 0.0 }
  0x61   :  { %v176_v21 = vadd.f32 %v175_v11, %v174_v15  ;;  %v373_v52 = vadd.f32 %v372_v43, %v371_v46  ;;  %v384_v15 = vsel %vm79_vm1, %v269_v2, 0.0  ;;  %v394_v43 = vsel %vm79_vm1, %v274_v32, 0.0 }
  0x62   :  { %v277_v46 = vmul.f32 %v74_v16, %v74_v16 }
  0x63   :  { %v178_v27 = vadd.f32 %v177_v17, %v176_v21  ;;  %v375_v58 = vadd.f32 %v374_v49, %v373_v52  ;;  %v386_v21 = vsel %vm79_vm1, %v270_v8, 0.0 }
  0x65   :  { %v180_v33 = vadd.f32 %v179_v23, %v178_v27  ;;  %v377_v0 = vadd.f32 %v376_v55, %v375_v58  ;;  %v388_v27 = vsel %vm79_vm1, %v271_v14, 0.0  ;;  %v400_v55 = vsel %vm79_vm1, %v277_v46, 0.0 }
  0x66   :  { %v280_v58 = vmul.f32 %v77_v34, %v77_v34 }
  0x67   :  { %v182_v39 = vadd.f32 %v181_v29, %v180_v33  ;;  %v379_v6 = vadd.f32 %v378_v61, %v377_v0  ;;  %v390_v33 = vsel %vm79_vm1, %v272_v20, 0.0 }
  0x68   :  { %v406_v2 = vsel %vm79_vm1, %v280_v58, 0.0 }
  0x69   :  { %v184_v45 = vadd.f32 %v183_v35, %v182_v39  ;;  %v381_v12 = vadd.f32 %v380_v3, %v379_v6  ;;  %v392_v39 = vsel %vm79_vm1, %v273_v26, 0.0 }
  0x6b   :  { %v186_v51 = vadd.f32 %v185_v41, %v184_v45  ;;  %v383_v18 = vadd.f32 %v382_v9, %v381_v12  ;;  %v216_v12 = vld [vmem:[%s768_s1 + $0x1] sm:$0x1] }
  0x6d   :  { %v188_v57 = vadd.f32 %v187_v47, %v186_v51  ;;  %v385_v24 = vadd.f32 %v384_v15, %v383_v18  ;;  %v396_v47 = vsel %vm79_vm1, %v275_v38, 0.0  ;;  %v398_v51 = vsel %vm79_vm1, %v276_v42, 0.0 }
  0x6f   :  { %v190_v63 = vadd.f32 %v189_v53, %v188_v57  ;;  %v387_v30 = vadd.f32 %v386_v21, %v385_v24 }
  0x71   :  { %v192_v5 = vadd.f32 %v191_v59, %v190_v63  ;;  %v389_v36 = vadd.f32 %v388_v27, %v387_v30  ;;  %v402_v59 = vsel %vm79_vm1, %v278_v50, 0.0 }
  0x73   :  { %v194_v11 = vadd.f32 %v193_v1, %v192_v5  ;;  %v391_v41 = vadd.f32 %v390_v33, %v389_v36  ;;  %v78_v1 = vld [vmem:[%s768_s1] sm:$0x1] }
  0x75   :  { %v196_v17 = vadd.f32 %v195_v7, %v194_v11  ;;  %v393_v45 = vadd.f32 %v392_v39, %v391_v41 }
  0x77   :  { %v198_v23 = vadd.f32 %v197_v13, %v196_v17  ;;  %v395_v49 = vadd.f32 %v394_v43, %v393_v45 }
  0x79   :  { %v200_v29 = vadd.f32 %v199_v19, %v198_v23  ;;  %v397_v53 = vadd.f32 %v396_v47, %v395_v49 }
  0x7b   :  { %v202_v35 = vadd.f32 %v201_v25, %v200_v29  ;;  %v399_v57 = vadd.f32 %v398_v51, %v397_v53 }
  0x7d   :  { %v204_v40 = vadd.f32 %v203_v31, %v202_v35  ;;  %v401_v61 = vadd.f32 %v400_v55, %v399_v57 }
  0x7f   :  { %v206_v44 = vadd.f32 %v205_v37, %v204_v40  ;;  %v403_v0 = vadd.f32 %v402_v59, %v401_v61 }
  0x81   :  { %v207_v48 = vrot.slane %v206_v44, 4  ;;  %v405_v4 = vadd.f32 %v404_v62, %v403_v0 }
  0x83   :  { %v208_v52 = vadd.f32 %v207_v48, %v206_v44  ;;  %v407_v6 = vadd.f32 %v406_v2, %v405_v4 }
  0x85   :  { %v209_v56 = vrot.slane %v208_v52, 2  ;;  %v408_v7 = vrot.slane %v407_v6, 4 }
  0x87   :  { %v210_v60 = vadd.f32 %v209_v56, %v208_v52  ;;  %v409_v8 = vadd.f32 %v408_v7, %v407_v6 }
  0x89   :  { %v211_v63 = vrot.slane %v210_v60, 1  ;;  %v410_v9 = vrot.slane %v409_v8, 2 }
  0x8b   :  { %v212_v3 = vadd.f32 %v211_v63, %v210_v60  ;;  %v411_v10 = vadd.f32 %v410_v9, %v409_v8 }
  0x8d   :  { %v213_v5 = vadd.f32 %v212_v3, %v78_v1  ;;  %v412_v11 = vrot.slane %v411_v10, 1 }
  0x8f   :  { %215 = vst.msk [vmem:[%s768_s1] sm:$0x1] %vm214_vm2, %v213_v5  ;;  %v413_v13 = vadd.f32 %v412_v11, %v411_v10 }
  0x91   :  { %v414_v14 = vadd.f32 %v413_v13, %v216_v12 }
  0x93   :  { %415 = vst.msk [vmem:[%s768_s1 + $0x1] sm:$0x1] %vm214_vm2, %v414_v14 }

// kernel: ratio_forward.4
= control target key start
LH: loop header
LB: loop body
LE: loop exit
PB: predicated region body
PF: predicated region fallthrough
CT: control target
= control target key end

     0   :  { %vm92_vm0 = vcmask 1043456   ;;  %vm43_vm1 = vcmask 31744   ;;  %vm20_vm2 = vcmask 25600   ;;  %v320_v61 = vmov 0.0   ;;  %s587_s1 = inlined_call_operand.vmem [shape: f32[4,4], index: 1, kind: input, shape index: {}]   ;;  %s588_s0 = inlined_call_operand.vmem [shape: f32[128,4], index: 0, kind: input, shape index: {}]   ;;  %s589_s2 = inlined_call_operand.vmem [shape: f32[1,4], index: 2, kind: input, shape index: {}]   ;;  %s590_s3 = inlined_call_operand.vmem [shape: f32[128,4], index: 3, kind: output, shape index: {0}]   ;;  %s591_s4 = inlined_call_operand.vmem [shape: f32[2,4], index: 4, kind: output, shape index: {1}]  }
   0x1   :  { %v38_v0 = vld [vmem:[%s587_s1] sm:$0xf]  ;;  %v23_v5 = vld [vmem:[%s588_s0 + $0x8] sm:$0xff]  ;;  %v24_v9 = vld [vmem:[%s588_s0 + $0x10] sm:$0xff]  ;;  %21 = vst.msk [vmem:[%s591_s4] sm:$0x3] %vm20_vm2, %v320_v61 }
   0x2   :  { %v22_v1 = vld [vmem:[%s588_s0] sm:$0xff]  ;;  %298 = vmatpush.msk.msra.mxu0 %vm92_vm0, %v38_v0  ;;  %315 = vmatpush.msk.msra.mxu1 %vm92_vm0, %v38_v0  ;;  %v27_v6 = vld [vmem:[%s588_s0 + $0x28] sm:$0xff]  ;;  %v28_v10 = vld [vmem:[%s588_s0 + $0x30] sm:$0xff]  ;;  %vm232_vm3 = vcmask 24576  }
   0x3   :  { %v26_v2 = vld [vmem:[%s588_s0 + $0x20] sm:$0xff]  ;;  %299 = vmatmul.msk.f32.vlgmr.msra.gmra.mxu0 %vm43_vm1, %v22_v1  ;;  %316 = vmatpush.msk.msra.mxu2 %vm92_vm0, %v38_v0  ;;  %v31_v7 = vld [vmem:[%s588_s0 + $0x48] sm:$0xff]  ;;  %v32_v11 = vld [vmem:[%s588_s0 + $0x50] sm:$0xff] }
   0x4   :  { %v30_v3 = vld [vmem:[%s588_s0 + $0x40] sm:$0xff]  ;;  %303 = vmatmul.msk.f32.vlgmr.msra.gmra.mxu1 %vm43_vm1, %v26_v2  ;;  %317 = vmatpush.msk.msra.mxu3 %vm92_vm0, %v38_v0  ;;  %v35_v8 = vld [vmem:[%s588_s0 + $0x68] sm:$0xff]  ;;  %v36_v12 = vld [vmem:[%s588_s0 + $0x70] sm:$0xff] }
   0x5   :  { %v34_v4 = vld [vmem:[%s588_s0 + $0x60] sm:$0xff]  ;;  %307 = vmatmul.msk.f32.vlgmr.msra.gmra.mxu2 %vm43_vm1, %v30_v3  ;;  %v25_v13 = vld [vmem:[%s588_s0 + $0x18] sm:$0xff] }
   0x6   :  { %311 = vmatmul.msk.f32.vlgmr.msra.gmra.mxu3 %vm43_vm1, %v34_v4  ;;  %v29_v14 = vld [vmem:[%s588_s0 + $0x38] sm:$0xff]  ;;  %v416_v17 = vld [vmem:[%s589_s2] ss:$0 sm:$0xff] }
   0x7   :  { %v33_v15 = vld [vmem:[%s588_s0 + $0x58] sm:$0xff] }
   0x8   :  { %v37_v16 = vld [vmem:[%s588_s0 + $0x78] sm:$0xff] }
   0xb   :  { %300 = vmatmul.msk.f32.gmra.mxu0 %vm43_vm1, %v23_v5 }
   0xc   :  { %304 = vmatmul.msk.f32.gmra.mxu1 %vm43_vm1, %v27_v6 }
   0xd   :  { %308 = vmatmul.msk.f32.gmra.mxu2 %vm43_vm1, %v31_v7 }
   0xe   :  { %312 = vmatmul.msk.f32.gmra.mxu3 %vm43_vm1, %v35_v8 }
  0x13   :  { %301 = vmatmul.msk.f32.gmra.mxu0 %vm43_vm1, %v24_v9 }
  0x14   :  { %305 = vmatmul.msk.f32.gmra.mxu1 %vm43_vm1, %v28_v10 }
  0x15   :  { %309 = vmatmul.msk.f32.gmra.mxu2 %vm43_vm1, %v32_v11 }
  0x16   :  { %313 = vmatmul.msk.f32.gmra.mxu3 %vm43_vm1, %v36_v12 }
  0x1b   :  { %302 = vmatmul.msk.f32.gmra.mxu0 %vm43_vm1, %v25_v13 }
  0x1c   :  { %306 = vmatmul.msk.f32.gmra.mxu1 %vm43_vm1, %v29_v14 }
  0x1d   :  { %310 = vmatmul.msk.f32.gmra.mxu2 %vm43_vm1, %v33_v15 }
  0x1e   :  { %314 = vmatmul.msk.f32.gmra.mxu3 %vm43_vm1, %v37_v16 }
  0x80   :  { %v113_v18 = vpop.f32.mrf.mxu0 }
  0x81   :  { %v125_v19 = vpop.f32.mrf.mxu1  ;;  %v114_v20 = vadd.f32 %v416_v17, %v113_v18 }
  0x82   :  { %v126_v21 = vadd.f32 %v416_v17, %v125_v19 }
  0x83   :  { %v161_v22 = vmax.f32 %v114_v20, 0.0 }
  0x84   :  { %v420_v23 = vmax.f32 %v126_v21, 0.0 }
  0x85   :  { %177 = vst.msk [vmem:[%s590_s3] sm:$0xff] %vm43_vm1, %v161_v22  ;;  %v235_v49 = vmul.f32 %v161_v22, %v161_v22  ;;  %v194_v52 = vsel %vm43_vm1, %v161_v22, 0.0 }
  0x86   :  { %181 = vst.msk [vmem:[%s590_s3 + $0x20] sm:$0xff] %vm43_vm1, %v420_v23  ;;  %v239_v9 = vmul.f32 %v420_v23, %v420_v23  ;;  %v201_v14 = vsel %vm43_vm1, %v420_v23, 0.0 }
  0x87   :  { %v251_v1 = vsel %vm43_vm1, %v235_v49, 0.0 }
  0x88   :  { %v116_v24 = vpop.f32.mrf.mxu0  ;;  %v137_v28 = vpop.f32.mrf.mxu2  ;;  %v258_v20 = vsel %vm43_vm1, %v239_v9, 0.0 }
  0x89   :  { %v128_v25 = vpop.f32.mrf.mxu1  ;;  %v117_v26 = vadd.f32 %v416_v17, %v116_v24  ;;  %v149_v29 = vpop.f32.mrf.mxu3  ;;  %v138_v30 = vadd.f32 %v416_v17, %v137_v28 }
  0x8a   :  { %v129_v27 = vadd.f32 %v416_v17, %v128_v25  ;;  %v150_v31 = vadd.f32 %v416_v17, %v149_v29 }
  0x8b   :  { %v162_v32 = vmax.f32 %v117_v26, 0.0  ;;  %v437_v34 = vmax.f32 %v138_v30, 0.0 }
  0x8c   :  { %v435_v33 = vmax.f32 %v129_v27, 0.0  ;;  %v439_v35 = vmax.f32 %v150_v31, 0.0 }
  0x8d   :  { %178 = vst.msk [vmem:[%s590_s3 + $0x8] sm:$0xff] %vm43_vm1, %v162_v32  ;;  %v236_v48 = vmul.f32 %v162_v32, %v162_v32  ;;  %v195_v50 = vsel %vm43_vm1, %v162_v32, 0.0 }
  0x8e   :  { %182 = vst.msk [vmem:[%s590_s3 + $0x28] sm:$0xff] %vm43_vm1, %v435_v33  ;;  %v196_v62 = vadd.f32 %v195_v50, %v194_v52  ;;  %v240_v15 = vmul.f32 %v435_v33, %v435_v33  ;;  %v203_v21 = vsel %vm43_vm1, %v435_v33, 0.0 }
  0x8f   :  { %185 = vst.msk [vmem:[%s590_s3 + $0x40] sm:$0xff] %vm43_vm1, %v437_v34  ;;  %v252_v55 = vsel %vm43_vm1, %v236_v48, 0.0 }
  0x90   :  { %v119_v36 = vpop.f32.mrf.mxu0  ;;  %189 = vst.msk [vmem:[%s590_s3 + $0x60] sm:$0xff] %vm43_vm1, %v439_v35  ;;  %v140_v40 = vpop.f32.mrf.mxu2  ;;  %v253_v5 = vadd.f32 %v252_v55, %v251_v1  ;;  %v260_v30 = vsel %vm43_vm1, %v240_v15, 0.0 }
  0x91   :  { %v131_v37 = vpop.f32.mrf.mxu1  ;;  %v120_v38 = vadd.f32 %v416_v17, %v119_v36  ;;  %v152_v41 = vpop.f32.mrf.mxu3  ;;  %v141_v42 = vadd.f32 %v416_v17, %v140_v40 }
  0x92   :  { %v132_v39 = vadd.f32 %v416_v17, %v131_v37  ;;  %v153_v43 = vadd.f32 %v416_v17, %v152_v41 }
  0x93   :  { %v163_v44 = vmax.f32 %v120_v38, 0.0  ;;  %v464_v46 = vmax.f32 %v141_v42, 0.0 }
  0x94   :  { %v167_v45 = vmax.f32 %v132_v39, 0.0  ;;  %v466_v47 = vmax.f32 %v153_v43, 0.0  ;;  %v243_v39 = vmul.f32 %v437_v34, %v437_v34 }
  0x95   :  { %179 = vst.msk [vmem:[%s590_s3 + $0x10] sm:$0xff] %vm43_vm1, %v163_v44  ;;  %v237_v51 = vmul.f32 %v163_v44, %v163_v44  ;;  %v197_v56 = vsel %vm43_vm1, %v163_v44, 0.0  ;;  %v244_v44 = vmul.f32 %v464_v46, %v464_v46  ;;  %v211_v50 = vsel %vm43_vm1, %v464_v46, 0.0 }
  0x96   :  { %183 = vst.msk [vmem:[%s590_s3 + $0x30] sm:$0xff] %vm43_vm1, %v167_v45  ;;  %v198_v6 = vadd.f32 %v197_v56, %v196_v62  ;;  %v241_v22 = vmul.f32 %v167_v45, %v167_v45  ;;  %v205_v31 = vsel %vm43_vm1, %v167_v45, 0.0  ;;  %v266_v49 = vsel %vm43_vm1, %v243_v39, 0.0 }
  0x97   :  { %186 = vst.msk [vmem:[%s590_s3 + $0x48] sm:$0xff] %vm43_vm1, %v464_v46  ;;  %v254_v2 = vsel %vm43_vm1, %v237_v51, 0.0 }
  0x98   :  { %v122_v53 = vpop.f32.mrf.mxu0  ;;  %190 = vst.msk [vmem:[%s590_s3 + $0x68] sm:$0xff] %vm43_vm1, %v466_v47  ;;  %v143_v59 = vpop.f32.mrf.mxu2  ;;  %v255_v12 = vadd.f32 %v254_v2, %v253_v5  ;;  %v262_v40 = vsel %vm43_vm1, %v241_v22, 0.0 }
  0x99   :  { %v134_v54 = vpop.f32.mrf.mxu1  ;;  %v123_v57 = vadd.f32 %v416_v17, %v122_v53  ;;  %v155_v60 = vpop.f32.mrf.mxu3  ;;  %v144_v63 = vadd.f32 %v416_v17, %v143_v59  ;;  %v247_v59 = vmul.f32 %v439_v35, %v439_v35 }
  0x9a   :  { %v135_v58 = vadd.f32 %v416_v17, %v134_v54  ;;  %v156_v0 = vadd.f32 %v416_v17, %v155_v60 }
  0x9b   :  { %v164_v3 = vmax.f32 %v123_v57, 0.0  ;;  %v171_v7 = vmax.f32 %v144_v63, 0.0  ;;  %v217_v63 = vsel %vm43_vm1, %v439_v35, 0.0 }
  0x9c   :  { %v168_v4 = vmax.f32 %v135_v58, 0.0  ;;  %v499_v8 = vmax.f32 %v156_v0, 0.0  ;;  %v248_v0 = vmul.f32 %v466_v47, %v466_v47 }
  0x9d   :  { %180 = vst.msk [vmem:[%s590_s3 + $0x18] sm:$0xff] %vm43_vm1, %v164_v3  ;;  %v199_v10 = vsel %vm43_vm1, %v164_v3, 0.0  ;;  %v238_v11 = vmul.f32 %v164_v3, %v164_v3  ;;  %v245_v51 = vmul.f32 %v171_v7, %v171_v7  ;;  %v213_v55 = vsel %vm43_vm1, %v171_v7, 0.0 }
  0x9e   :  { %v200_v13 = vadd.f32 %v199_v10, %v198_v6  ;;  %184 = vst.msk [vmem:[%s590_s3 + $0x38] sm:$0xff] %vm43_vm1, %v168_v4  ;;  %v242_v23 = vmul.f32 %v168_v4, %v168_v4  ;;  %v207_v32 = vsel %vm43_vm1, %v168_v4, 0.0  ;;  %v274_v3 = vsel %vm43_vm1, %v247_v59, 0.0 }
  0x9f   :  { %v256_v16 = vsel %vm43_vm1, %v238_v11, 0.0  ;;  %187 = vst.msk [vmem:[%s590_s3 + $0x50] sm:$0xff] %vm43_vm1, %v171_v7  ;;  %v270_v60 = vsel %vm43_vm1, %v245_v51, 0.0  ;;  %v219_v4 = vsel %vm43_vm1, %v466_v47, 0.0  ;;  %v249_v5 = vmul.f32 %v499_v8, %v499_v8 }
  0xa0   :  { %v202_v18 = vadd.f32 %v201_v14, %v200_v13  ;;  %v257_v19 = vadd.f32 %v256_v16, %v255_v12  ;;  %191 = vst.msk [vmem:[%s590_s3 + $0x70] sm:$0xff] %vm43_vm1, %v499_v8  ;;  %v146_v24 = vpop.f32.mrf.mxu2  ;;  %v264_v41 = vsel %vm43_vm1, %v242_v23, 0.0  ;;  %v276_v10 = vsel %vm43_vm1, %v248_v0, 0.0 }
  0xa1   :  { %v158_v25 = vpop.f32.mrf.mxu3  ;;  %v147_v28 = vadd.f32 %v416_v17, %v146_v24  ;;  %v221_v35 = vsel %vm43_vm1, %v499_v8, 0.0  ;;  %v278_v14 = vsel %vm43_vm1, %v249_v5, 0.0 }
  0xa2   :  { %v259_v26 = vadd.f32 %v258_v20, %v257_v19  ;;  %v204_v27 = vadd.f32 %v203_v21, %v202_v18  ;;  %v159_v29 = vadd.f32 %v416_v17, %v158_v25  ;;  %v209_v17 = vsel %vm43_vm1, %v437_v34, 0.0 }
  0xa3   :  { %v172_v38 = vmax.f32 %v147_v28, 0.0  ;;  %v268_v34 = vsel %vm43_vm1, %v244_v44, 0.0 }
  0xa4   :  { %v206_v36 = vadd.f32 %v205_v31, %v204_v27  ;;  %v261_v37 = vadd.f32 %v260_v30, %v259_v26  ;;  %v176_v33 = vmax.f32 %v159_v29, 0.0  ;;  %v193_v27 = vld [vmem:[%s591_s4] sm:$0x1]  ;;  %v234_v30 = vld [vmem:[%s591_s4 + $0x1] sm:$0x1] }
  0xa5   :  { %188 = vst.msk [vmem:[%s590_s3 + $0x58] sm:$0xff] %vm43_vm1, %v172_v38  ;;  %v246_v52 = vmul.f32 %v172_v38, %v172_v38  ;;  %v215_v56 = vsel %vm43_vm1, %v172_v38, 0.0 }
  0xa6   :  { %v263_v42 = vadd.f32 %v262_v40, %v261_v37  ;;  %v208_v43 = vadd.f32 %v207_v32, %v206_v36  ;;  %192 = vst.msk [vmem:[%s590_s3 + $0x78] sm:$0xff] %vm43_vm1, %v176_v33  ;;  %v250_v6 = vmul.f32 %v176_v33, %v176_v33  ;;  %v223_v11 = vsel %vm43_vm1, %v176_v33, 0.0 }
  0xa7   :  { %v272_v61 = vsel %vm43_vm1, %v246_v52, 0.0 }
  0xa8   :  { %v210_v45 = vadd.f32 %v209_v17, %v208_v43  ;;  %v265_v48 = vadd.f32 %v264_v41, %v263_v42  ;;  %v280_v15 = vsel %vm43_vm1, %v250_v6, 0.0 }
  0xaa   :  { %v267_v53 = vadd.f32 %v266_v49, %v265_v48  ;;  %v212_v54 = vadd.f32 %v211_v50, %v210_v45 }
  0xac   :  { %v214_v57 = vadd.f32 %v213_v55, %v212_v54  ;;  %v269_v58 = vadd.f32 %v268_v34, %v267_v53 }
  0xae   :  { %v271_v46 = vadd.f32 %v270_v60, %v269_v58  ;;  %v216_v62 = vadd.f32 %v215_v56, %v214_v57 }
  0xb0   :  { %v218_v1 = vadd.f32 %v217_v63, %v216_v62  ;;  %v273_v2 = vadd.f32 %v272_v61, %v271_v46 }
  0xb2   :  { %v275_v7 = vadd.f32 %v274_v3, %v273_v2  ;;  %v220_v9 = vadd.f32 %v219_v4, %v218_v1 }
  0xb4   :  { %v222_v12 = vadd.f32 %v221_v35, %v220_v9  ;;  %v277_v13 = vadd.f32 %v276_v10, %v275_v7 }
  0xb6   :  { %v279_v47 = vadd.f32 %v278_v14, %v277_v13  ;;  %v224_v16 = vadd.f32 %v223_v11, %v222_v12 }
  0xb8   :  { %v225_v18 = vrot.slane %v224_v16, 4  ;;  %v281_v19 = vadd.f32 %v280_v15, %v279_v47 }
  0xba   :  { %v226_v20 = vadd.f32 %v225_v18, %v224_v16  ;;  %v282_v21 = vrot.slane %v281_v19, 4 }
  0xbc   :  { %v227_v22 = vrot.slane %v226_v20, 2  ;;  %v283_v23 = vadd.f32 %v282_v21, %v281_v19 }
  0xbe   :  { %v228_v24 = vadd.f32 %v227_v22, %v226_v20  ;;  %v284_v25 = vrot.slane %v283_v23, 2 }
  0xc0   :  { %v229_v26 = vrot.slane %v228_v24, 1  ;;  %v285_v8 = vadd.f32 %v284_v25, %v283_v23 }
  0xc2   :  { %v230_v28 = vadd.f32 %v229_v26, %v228_v24  ;;  %v286_v29 = vrot.slane %v285_v8, 1 }
  0xc4   :  { %v231_v31 = vadd.f32 %v230_v28, %v193_v27  ;;  %v287_v32 = vadd.f32 %v286_v29, %v285_v8 }
  0xc6   :  { %233 = vst.msk [vmem:[%s591_s4] sm:$0x1] %vm232_vm3, %v231_v31  ;;  %v288_v36 = vadd.f32 %v287_v32, %v234_v30 }
  0xc8   :  { %289 = vst.msk [vmem:[%s591_s4 + $0x1] sm:$0x1] %vm232_vm3, %v288_v36 }

// kernel: ratio_forward.5
= control target key start
LH: loop header
LB: loop body
LE: loop exit
PB: predicated region body
PF: predicated region fallthrough
CT: control target
= control target key end

     0   :  { %s1445_s18 = smov 0   ;;  %s1803_s0 = inlined_call_operand.vmem [shape: f32[2,8,8,4], index: 0, kind: input, shape index: {}]   ;;  %s1804_s1 = inlined_call_operand.vmem [shape: f32[1,4], index: 1, kind: input, shape index: {}]   ;;  %s1805_s2 = inlined_call_operand.vmem [shape: f32[1,4], index: 2, kind: input, shape index: {}]   ;;  %s1806_s3 = inlined_call_operand.vmem [shape: f32[3,3,4,8], index: 3, kind: input, shape index: {}]   ;;  %s1807_s4 = inlined_call_operand.vmem [shape: f32[1,8], index: 4, kind: input, shape index: {}]   ;;  %s1808_s5 = inlined_call_operand.vmem [shape: f32[2,8,8,8], index: 5, kind: output, shape index: {}]  }
   0x1 LB: > { %s1289_s19 = sadd.s32 4294967295, %s1412_s18   ;;  %p1293_p0 = scmp.ge.s32.totalorder %s1412_s18, 1  ;;  %s1412_s18 = sphi %s1445_s18, %s15_s18  }
   0x2   : > { %p187_p1 = scmp.lt.s32.totalorder %s1412_s18, 3 }
   0x4   : > { %p188_p2 = pnand %p1293_p0, %p187_p1 }
   0x5   : > { %p215_p3 = scmp.lt.s32.totalorder (!%p188_p2), %s1289_s19, 1 }
   0x6   : > { %191 = sbr.rel (%p188_p2) target bundleno = 345 (0x159), region = 40 }
   0xb   : > { %v302_v0 = vld [vmem:[%s1806_s3] sm:$0xf]  ;;  %vm327_vm0 = vcmask 1043456   ;;  %vm225_vm1 = vcmask 31744   ;;  %vm232_vm2 = vcmask 24576   ;;  %v1414_v1 = vmov 0.0  }
   0xc   : > { %1391 = vmatpush.msk.msra.mxu1 %vm327_vm0, %v302_v0  ;;  %226 = vst.msk [vmem:[#allocation2] sm:$0xff] %vm225_vm1, %v1414_v1  ;;  %1392 = vmatpush.msk.msra.mxu2 %vm327_vm0, %v302_v0  ;;  %s1810_s19 = smov (!%p215_p3, %s1289_s19), 1  ;;  %v1469_v2 = vld [vmem:[%s1804_s1] ss:$0 sm:$0xff]  ;;  %v1307_v3 = vld [vmem:[%s1806_s3 + $0x4] sm:$0xf] }
   0xd   : > { %235 = vst.msk [vmem:[#allocation2 + $0x20] sm:$0x1] %vm232_vm2, %v1414_v1  ;;  %1298 = vmatpush.msk.msra.mxu0 %vm327_vm0, %v302_v0  ;;  %1393 = vmatpush.msk.msra.mxu3 %vm327_vm0, %v302_v0  ;;  %s1389_s26 = sshll.u32 %s1810_s19, 6  ;;  %v1317_v4 = vld [vmem:[%s1806_s3 + $0x8] sm:$0xf]  ;;  %vm227_vm3 = vcmask 25600  }
   0xe   : > { %230 = vst.msk [vmem:[#allocation2 + $0x90] sm:$0xff] %vm225_vm1, %v1414_v1  ;;  %1308 = vmatpush.msk.msrb.mxu1 %vm327_vm0, %v1307_v3  ;;  %s1488_s6 = scalar_lea.vmem %s1803_s0, %s1389_s26  ;;  %v1493_v5 = vld [vmem:[%s1805_s2] ss:$0 sm:$0xff]  ;;  %1318 = vmatpush.msk.msrb.mxu2 %vm327_vm0, %v1317_v4  ;;  %v1327_v8 = vld [vmem:[%s1806_s3 + $0xc] sm:$0xf]  ;;  %vm372_vm4 = vcmask 64512   ;;  %s1758_s28 = scalar_lea.vmem %s1808_s5, %s1389_s26 }
   0xf   : > { %234 = vst.msk [vmem:[#allocation2 + $0x10] sm:$0x1] %vm232_vm2, %v1414_v1  ;;  %v254_v6 = vld [vmem:[%s1488_s6 + $0x8] sm:$0xff]  ;;  %1328 = vmatpush.msk.msrb.mxu3 %vm327_vm0, %v1327_v8  ;;  %v256_v10 = vld [vmem:[%s1488_s6 + $0x18] sm:$0xff]  ;;  %v255_v11 = vld [vmem:[%s1488_s6 + $0x10] sm:$0xff] }
  0x10   : > { %236 = vst.msk [vmem:[#allocation2 + $0x30] sm:$0x1] %vm232_vm2, %v1414_v1  ;;  %v266_v7 = vmul.f32 %v1469_v2, %v254_v6  ;;  %v257_v12 = vld [vmem:[%s1488_s6 + $0x20] sm:$0xff]  ;;  %v268_v13 = vmul.f32 %v1469_v2, %v256_v10  ;;  %v258_v14 = vld [vmem:[%s1488_s6 + $0x28] sm:$0xff]  ;;  %v267_v15 = vmul.f32 %v1469_v2, %v255_v11  ;;  %v1347_v19 = vld [vmem:[%s1806_s3 + $0x14] sm:$0xf] }
  0x11   : > { %237 = vst.msk [vmem:[#allocation2 + $0x40] sm:$0x1] %vm232_vm2, %v1414_v1  ;;  %v253_v16 = vld [vmem:[%s1488_s6] sm:$0xff]  ;;  %v269_v17 = vmul.f32 %v1469_v2, %v257_v12  ;;  %v270_v18 = vmul.f32 %v1469_v2, %v258_v14  ;;  %v259_v25 = vld [vmem:[%s1488_s6 + $0x30] sm:$0xff]  ;;  %v1357_v32 = vld [vmem:[%s1806_s3 + $0x18] sm:$0xf] }
  0x12   : > { %238 = vst.msk [vmem:[#allocation2 + $0x50] sm:$0x1] %vm232_vm2, %v1414_v1  ;;  %v278_v9 = vadd.f32 %v1493_v5, %v266_v7  ;;  %v280_v21 = vadd.f32 %v1493_v5, %v268_v13  ;;  %v265_v22 = vmul.f32 %v1469_v2, %v253_v16  ;;  %v279_v23 = vadd.f32 %v1493_v5, %v267_v15  ;;  %v1337_v28 = vld [vmem:[%s1806_s3 + $0x10] sm:$0xf]  ;;  %v1367_v35 = vld [vmem:[%s1806_s3 + $0x1c] sm:$0xf] }
  0x13   : > { %239 = vst.msk [vmem:[#allocation2 + $0x60] sm:$0x1] %vm232_vm2, %v1414_v1  ;;  %v281_v24 = vadd.f32 %v1493_v5, %v269_v17  ;;  %v282_v26 = vadd.f32 %v1493_v5, %v270_v18  ;;  %v271_v29 = vmul.f32 %v1469_v2, %v259_v25  ;;  %1338 = vmatpush.msk.msrb.mxu0 %vm327_vm0, %v1337_v28  ;;  %v1377_v41 = vld [vmem:[%s1806_s3 + $0x20] sm:$0xf]  ;;  %v260_v50 = vld [vmem:[%s1488_s6 + $0x38] sm:$0xff] }
  0x14   : > { %240 = vst.msk [vmem:[#allocation2 + $0x70] sm:$0x1] %vm232_vm2, %v1414_v1  ;;  %v277_v27 = vadd.f32 %v1493_v5, %v265_v22  ;;  %v272_v51 = vmul.f32 %v1469_v2, %v260_v50 }
  0x15   : > { %241 = vst.msk [vmem:[#allocation2 + $0x80] sm:$0x1] %vm232_vm2, %v1414_v1  ;;  %v283_v31 = vadd.f32 %v1493_v5, %v271_v29 }
  0x16   : > { %287 = vst.msk [vmem:[#allocation2 + $0x21] sm:$0xff] %vm225_vm1, %v278_v9  ;;  %v284_v52 = vadd.f32 %v1493_v5, %v272_v51 }
  0x17   : > { %244 = vst.msk [vmem:[#allocation2 + $0x19] sm:$0x1] %vm232_vm2, %v1414_v1 }
  0x18   : > { %245 = vst.msk [vmem:[#allocation2 + $0x29] sm:$0x1] %vm232_vm2, %v1414_v1 }
  0x19   : > { %246 = vst.msk [vmem:[#allocation2 + $0x39] sm:$0x1] %vm232_vm2, %v1414_v1 }
  0x1a   : > { %247 = vst.msk [vmem:[#allocation2 + $0x49] sm:$0x1] %vm232_vm2, %v1414_v1 }
  0x1b   : > { %248 = vst.msk [vmem:[#allocation2 + $0x59] sm:$0x1] %vm232_vm2, %v1414_v1 }
  0x1c   : > { %249 = vst.msk [vmem:[#allocation2 + $0x69] sm:$0x1] %vm232_vm2, %v1414_v1 }
  0x1d   : > { %v1540_v20 = vld [vmem:[#allocation2 + $0x20] sm:$0xff]  ;;  %250 = vst.msk [vmem:[#allocation2 + $0x79] sm:$0x1] %vm232_vm2, %v1414_v1 }
  0x1e   : > { %1301 = vmatmul.msk.f32.vlgmr.msra.gmra.mxu1 %vm225_vm1, %v1540_v20  ;;  %251 = vst.msk [vmem:[#allocation2 + $0x89] sm:$0x1] %vm232_vm2, %v1414_v1  ;;  %v383_v45 = vld [vmem:[#allocation2 + $0x21] sm:$0xff] }
  0x1f   : > { %233 = vst.msk [vmem:[#allocation2] sm:$0x1] %vm232_vm2, %v1414_v1  ;;  %1348 = vmatpush.msk.msra.mxu1 %vm327_vm0, %v1347_v19  ;;  %v485_v46 = vld [vmem:[#allocation2 + $0x22] sm:$0xff] }
  0x20   : > { %242 = vst.msk [vmem:[#allocation2 + $0x90] sm:$0x1] %vm232_vm2, %v1414_v1 }
  0x21   : > { %289 = vst.msk [vmem:[#allocation2 + $0x41] sm:$0xff] %vm225_vm1, %v280_v21 }
  0x22   : > { %288 = vst.msk [vmem:[#allocation2 + $0x31] sm:$0xff] %vm225_vm1, %v279_v23 }
  0x23   : > { %290 = vst.msk [vmem:[#allocation2 + $0x51] sm:$0xff] %vm225_vm1, %v281_v24 }
  0x24   : > { %291 = vst.msk [vmem:[#allocation2 + $0x61] sm:$0xff] %vm225_vm1, %v282_v26 }
  0x25   : > { %286 = vst.msk [vmem:[#allocation2 + $0x11] sm:$0xff] %vm225_vm1, %v277_v27 }
  0x26   : > { %v294_v30 = vld [vmem:[#allocation2] sm:$0xff]  ;;  %228 = vst.msk [vmem:[#allocation2 + $0x8] sm:$0x3] %vm227_vm3, %v1414_v1 }
  0x27   : > { %1299 = vmatmul.msk.f32.vlgmr.msra.gmra.mxu0 %vm225_vm1, %v294_v30  ;;  %231 = vst.msk [vmem:[#allocation2 + $0x98] sm:$0x3] %vm227_vm3, %v1414_v1  ;;  %v899_v6 = vld [vmem:[#allocation2 + $0x90] sm:$0xff] }
  0x28   : > { %v1577_v33 = vld [vmem:[#allocation2 + $0x40] sm:$0xff]  ;;  %243 = vst.msk [vmem:[#allocation2 + $0x9] sm:$0x1] %vm232_vm2, %v1414_v1  ;;  %1378 = vmatpush.msk.msra.mxu0 %vm327_vm0, %v1377_v41 }
  0x29   : > { %1303 = vmatmul.msk.f32.vlgmr.msra.gmra.mxu2 %vm225_vm1, %v1577_v33  ;;  %v1583_v34 = vld [vmem:[#allocation2 + $0x30] sm:$0xff]  ;;  %252 = vst.msk [vmem:[#allocation2 + $0x99] sm:$0x1] %vm232_vm2, %v1414_v1  ;;  %v385_v49 = vld [vmem:[#allocation2 + $0x41] sm:$0xff] }
  0x2a   : > { %1302 = vmatmul.msk.f32.gmra.mxu1 %vm225_vm1, %v1583_v34  ;;  %1358 = vmatpush.msk.msra.mxu2 %vm327_vm0, %v1357_v32  ;;  %292 = vst.msk [vmem:[#allocation2 + $0x71] sm:$0xff] %vm225_vm1, %v283_v31  ;;  %v1599_v38 = vld [vmem:[#allocation2 + $0x50] sm:$0xff]  ;;  %v487_v53 = vld [vmem:[#allocation2 + $0x42] sm:$0xff] }
  0x2b   : > { %v1594_v36 = vld [vmem:[#allocation2 + $0x60] sm:$0xff]  ;;  %v384_v47 = vld [vmem:[#allocation2 + $0x31] sm:$0xff]  ;;  %293 = vst.msk [vmem:[#allocation2 + $0x81] sm:$0xff] %vm225_vm1, %v284_v52 }
  0x2c   : > { %1305 = vmatmul.msk.f32.vlgmr.msra.gmra.mxu3 %vm225_vm1, %v1594_v36  ;;  %v295_v37 = vld [vmem:[#allocation2 + $0x10] sm:$0xff]  ;;  %v387_v56 = vld [vmem:[#allocation2 + $0x61] sm:$0xff] }
  0x2d   : > { %1368 = vmatpush.msk.msra.mxu3 %vm327_vm0, %v1367_v35  ;;  %v381_v39 = vld [vmem:[#allocation2 + $0x1] sm:$0xff]  ;;  %v382_v43 = vld [vmem:[#allocation2 + $0x11] sm:$0xff] }
  0x2e   : > { %v484_v44 = vld [vmem:[#allocation2 + $0x12] sm:$0xff]  ;;  %v489_v57 = vld [vmem:[#allocation2 + $0x62] sm:$0xff] }
  0x2f   : > { %1300 = vmatmul.msk.f32.gmra.mxu0 %vm225_vm1, %v295_v37  ;;  %v483_v42 = vld [vmem:[#allocation2 + $0x2] sm:$0xff]  ;;  %v486_v48 = vld [vmem:[#allocation2 + $0x32] sm:$0xff] }
  0x30   : > { %v386_v54 = vld [vmem:[#allocation2 + $0x51] sm:$0xff] }
  0x31   : > { %1304 = vmatmul.msk.f32.gmra.mxu2 %vm225_vm1, %v1599_v38  ;;  %v1604_v40 = vld [vmem:[#allocation2 + $0x70] sm:$0xff] }
  0x32   : > { %1309 = vmatmul.msk.f32.vlgmr.msrb.gmra.mxu1 %vm225_vm1, %v381_v39  ;;  %v488_v55 = vld [vmem:[#allocation2 + $0x52] sm:$0xff]  ;;  %v694_v59 = vld [vmem:[#allocation2 + $0x81] sm:$0xff] }
  0x33   : > { %v388_v58 = vld [vmem:[#allocation2 + $0x71] sm:$0xff]  ;;  %v592_v61 = vld [vmem:[#allocation2 + $0x80] sm:$0xff] }
  0x34   : > { %1306 = vmatmul.msk.f32.gmra.mxu3 %vm225_vm1, %v1604_v40  ;;  %v490_v60 = vld [vmem:[#allocation2 + $0x72] sm:$0xff]  ;;  %v796_v0 = vld [vmem:[#allocation2 + $0x82] sm:$0xff] }
  0x35   : > { %v1103_v4 = vld [vmem:[#allocation2 + $0x92] sm:$0xff] }
  0x36   : > { %v1001_v10 = vld [vmem:[#allocation2 + $0x91] sm:$0xff] }
  0x37   : > { %1339 = vmatmul.msk.f32.vlgmr.msrb.gmra.mxu0 %vm225_vm1, %v382_v43 }
  0x39   : > { %1319 = vmatmul.msk.f32.vlgmr.msrb.gmra.mxu2 %vm225_vm1, %v483_v42 }
  0x3a   : > { %1310 = vmatmul.msk.f32.gmra.mxu1 %vm225_vm1, %v382_v43 }
  0x3c   : > { %1329 = vmatmul.msk.f32.vlgmr.msrb.gmra.mxu3 %vm225_vm1, %v295_v37 }
  0x3f   : > { %1340 = vmatmul.msk.f32.gmra.mxu0 %vm225_vm1, %v383_v45 }
  0x41   : > { %1320 = vmatmul.msk.f32.gmra.mxu2 %vm225_vm1, %v484_v44 }
  0x42   : > { %1311 = vmatmul.msk.f32.gmra.mxu1 %vm225_vm1, %v383_v45 }
  0x44   : > { %1330 = vmatmul.msk.f32.gmra.mxu3 %vm225_vm1, %v1540_v20 }
  0x47   : > { %1341 = vmatmul.msk.f32.gmra.mxu0 %vm225_vm1, %v384_v47 }
  0x49   : > { %1321 = vmatmul.msk.f32.gmra.mxu2 %vm225_vm1, %v485_v46 }
  0x4a   : > { %1312 = vmatmul.msk.f32.gmra.mxu1 %vm225_vm1, %v384_v47 }
  0x4c   : > { %1331 = vmatmul.msk.f32.gmra.mxu3 %vm225_vm1, %v1583_v34 }
  0x4f   : > { %1342 = vmatmul.msk.f32.gmra.mxu0 %vm225_vm1, %v385_v49 }
  0x51   : > { %1322 = vmatmul.msk.f32.gmra.mxu2 %vm225_vm1, %v486_v48 }
  0x52   : > { %1313 = vmatmul.msk.f32.gmra.mxu1 %vm225_vm1, %v385_v49 }
  0x54   : > { %1332 = vmatmul.msk.f32.gmra.mxu3 %vm225_vm1, %v1577_v33 }
  0x57   : > { %1343 = vmatmul.msk.f32.gmra.mxu0 %vm225_vm1, %v386_v54 }
  0x59   : > { %1323 = vmatmul.msk.f32.gmra.mxu2 %vm225_vm1, %v487_v53 }
  0x5a   : > { %1314 = vmatmul.msk.f32.gmra.mxu1 %vm225_vm1, %v386_v54 }
  0x5c   : > { %1333 = vmatmul.msk.f32.gmra.mxu3 %vm225_vm1, %v1599_v38 }
  0x5f   : > { %1344 = vmatmul.msk.f32.gmra.mxu0 %vm225_vm1, %v387_v56 }
  0x61   : > { %1324 = vmatmul.msk.f32.gmra.mxu2 %vm225_vm1, %v488_v55 }
  0x62   : > { %1315 = vmatmul.msk.f32.gmra.mxu1 %vm225_vm1, %v387_v56 }
  0x64   : > { %1334 = vmatmul.msk.f32.gmra.mxu3 %vm225_vm1, %v1594_v36 }
  0x67   : > { %1345 = vmatmul.msk.f32.gmra.mxu0 %vm225_vm1, %v388_v58 }
  0x69   : > { %1325 = vmatmul.msk.f32.gmra.mxu2 %vm225_vm1, %v489_v57 }
  0x6a   : > { %1316 = vmatmul.msk.f32.gmra.mxu1 %vm225_vm1, %v388_v58 }
  0x6c   : > { %1335 = vmatmul.msk.f32.gmra.mxu3 %vm225_vm1, %v1604_v40 }
  0x6f   : > { %1346 = vmatmul.msk.f32.gmra.mxu0 %vm225_vm1, %v694_v59 }
  0x71   : > { %1326 = vmatmul.msk.f32.gmra.mxu2 %vm225_vm1, %v490_v60 }
  0x72   : > { %1349 = vmatmul.msk.f32.vlgmr.msra.gmra.mxu1 %vm225_vm1, %v484_v44 }
  0x74   : > { %1336 = vmatmul.msk.f32.gmra.mxu3 %vm225_vm1, %v592_v61 }
  0x77   : > { %1379 = vmatmul.msk.f32.vlgmr.msra.gmra.mxu0 %vm225_vm1, %v485_v46 }
  0x79   : > { %1359 = vmatmul.msk.f32.vlgmr.msra.gmra.mxu2 %vm225_vm1, %v1540_v20 }
  0x7a   : > { %1350 = vmatmul.msk.f32.gmra.mxu1 %vm225_vm1, %v485_v46 }
  0x7c   : > { %1369 = vmatmul.msk.f32.vlgmr.msra.gmra.mxu3 %vm225_vm1, %v383_v45 }
  0x7f   : > { %1380 = vmatmul.msk.f32.gmra.mxu0 %vm225_vm1, %v486_v48 }
  0x81   : > { %1360 = vmatmul.msk.f32.gmra.mxu2 %vm225_vm1, %v1583_v34 }
  0x82   : > { %1351 = vmatmul.msk.f32.gmra.mxu1 %vm225_vm1, %v486_v48 }
  0x84   : > { %1370 = vmatmul.msk.f32.gmra.mxu3 %vm225_vm1, %v384_v47 }
  0x87   : > { %1381 = vmatmul.msk.f32.gmra.mxu0 %vm225_vm1, %v487_v53 }
  0x89   : > { %1361 = vmatmul.msk.f32.gmra.mxu2 %vm225_vm1, %v1577_v33 }
  0x8a   : > { %1352 = vmatmul.msk.f32.gmra.mxu1 %vm225_vm1, %v487_v53 }
  0x8c   : > { %1371 = vmatmul.msk.f32.gmra.mxu3 %vm225_vm1, %v385_v49 }
  0x8f   : > { %1382 = vmatmul.msk.f32.gmra.mxu0 %vm225_vm1, %v488_v55 }
  0x91   : > { %1362 = vmatmul.msk.f32.gmra.mxu2 %vm225_vm1, %v1599_v38 }
  0x92   : > { %1353 = vmatmul.msk.f32.gmra.mxu1 %vm225_vm1, %v488_v55 }
  0x94   : > { %1372 = vmatmul.msk.f32.gmra.mxu3 %vm225_vm1, %v386_v54 }
  0x97   : > { %1383 = vmatmul.msk.f32.gmra.mxu0 %vm225_vm1, %v489_v57 }
  0x99   : > { %1363 = vmatmul.msk.f32.gmra.mxu2 %vm225_vm1, %v1594_v36 }
  0x9a   : > { %1354 = vmatmul.msk.f32.gmra.mxu1 %vm225_vm1, %v489_v57 }
  0x9b   : > { %v354_v62 = vpop.f32.mrf.mxu1 }
  0x9c   : > { %375 = vst.msk [vmem:[#allocation3 + $0x10] sm:$0xff] %vm372_vm4, %v354_v62  ;;  %1373 = vmatmul.msk.f32.gmra.mxu3 %vm225_vm1, %v387_v56 }
  0x9f   : > { %1384 = vmatmul.msk.f32.gmra.mxu0 %vm225_vm1, %v490_v60 }
  0xa1   : > { %1364 = vmatmul.msk.f32.gmra.mxu2 %vm225_vm1, %v1604_v40 }
  0xa2   : > { %1355 = vmatmul.msk.f32.gmra.mxu1 %vm225_vm1, %v490_v60 }
  0xa3   : > { %v461_v22 = vld [vmem:[#allocation3 + $0x10] sm:$0xff] }
  0xa4   : > { %v348_v63 = vpop.f32.mrf.mxu0  ;;  %1374 = vmatmul.msk.f32.gmra.mxu3 %vm225_vm1, %v388_v58 }
  0xa5   : > { %373 = vst.msk [vmem:[#allocation3] sm:$0xff] %vm372_vm4, %v348_v63 }
  0xa7   : > { %v357_v1 = vpop.f32.mrf.mxu1  ;;  %1385 = vmatmul.msk.f32.gmra.mxu0 %vm225_vm1, %v796_v0 }
  0xa8   : > { %376 = vst.msk [vmem:[#allocation3 + $0x18] sm:$0xff] %vm372_vm4, %v357_v1 }
  0xa9   : > { %1365 = vmatmul.msk.f32.gmra.mxu2 %vm225_vm1, %v592_v61 }
  0xaa   : > { %1356 = vmatmul.msk.f32.gmra.mxu1 %vm225_vm1, %v796_v0 }
  0xac   : > { %v360_v2 = vpop.f32.mrf.mxu2  ;;  %v351_v3 = vpop.f32.mrf.mxu0  ;;  %1375 = vmatmul.msk.f32.gmra.mxu3 %vm225_vm1, %v694_v59  ;;  %v459_v5 = vld [vmem:[#allocation3] sm:$0xff] }
  0xad   : > { %377 = vst.msk [vmem:[#allocation3 + $0x20] sm:$0xff] %vm372_vm4, %v360_v2 }
  0xae   : > { %374 = vst.msk [vmem:[#allocation3 + $0x8] sm:$0xff] %vm372_vm4, %v351_v3 }
  0xaf   : > { %v435_v7 = vpop.f32.mrf.mxu1  ;;  %v366_v8 = vpop.f32.mrf.mxu3  ;;  %1386 = vmatmul.msk.f32.gmra.mxu0 %vm225_vm1, %v1103_v4  ;;  %v462_v32 = vld [vmem:[#allocation3 + $0x18] sm:$0xff] }
  0xb0   : > { %v467_v9 = vadd.f32 %v459_v5, %v435_v7  ;;  %379 = vst.msk [vmem:[#allocation3 + $0x30] sm:$0xff] %vm372_vm4, %v366_v8 }
  0xb1   : > { %1366 = vmatmul.msk.f32.gmra.mxu2 %vm225_vm1, %v899_v6 }
  0xb2   : > { %475 = vst.msk [vmem:[#allocation3] sm:$0xff] %vm372_vm4, %v467_v9 }
  0xb4   : > { %v363_v11 = vpop.f32.mrf.mxu2  ;;  %1376 = vmatmul.msk.f32.gmra.mxu3 %vm225_vm1, %v1001_v10  ;;  %v741_v12 = vpop.f32.mrf.mxu0  ;;  %v463_v42 = vld [vmem:[#allocation3 + $0x20] sm:$0xff] }
  0xb5   : > { %378 = vst.msk [vmem:[#allocation3 + $0x28] sm:$0xff] %vm372_vm4, %v363_v11  ;;  %v460_v13 = vld [vmem:[#allocation3 + $0x8] sm:$0xff] }
  0xb7   : > { %v438_v14 = vpop.f32.mrf.mxu1  ;;  %v369_v15 = vpop.f32.mrf.mxu3  ;;  %v465_v1 = vld [vmem:[#allocation3 + $0x30] sm:$0xff] }
  0xb8   : > { %v468_v16 = vadd.f32 %v460_v13, %v438_v14  ;;  %380 = vst.msk [vmem:[#allocation3 + $0x38] sm:$0xff] %vm372_vm4, %v369_v15 }
  0xb9   : > { %v561_v17 = vld [vmem:[#allocation3] sm:$0xff] }
  0xba   : > { %476 = vst.msk [vmem:[#allocation3 + $0x8] sm:$0xff] %vm372_vm4, %v468_v16 }
  0xbc   : > { %v537_v18 = vpop.f32.mrf.mxu2  ;;  %v744_v19 = vpop.f32.mrf.mxu0  ;;  %v464_v53 = vld [vmem:[#allocation3 + $0x28] sm:$0xff] }
  0xbd   : > { %v569_v20 = vadd.f32 %v561_v17, %v537_v18 }
  0xbf   : > { %577 = vst.msk [vmem:[#allocation3] sm:$0xff] %vm372_vm4, %v569_v20  ;;  %v441_v21 = vpop.f32.mrf.mxu1  ;;  %v639_v23 = vpop.f32.mrf.mxu3  ;;  %v466_v13 = vld [vmem:[#allocation3 + $0x38] sm:$0xff] }
  0xc0   : > { %v469_v24 = vadd.f32 %v461_v22, %v441_v21 }
  0xc1   : > { %v562_v25 = vld [vmem:[#allocation3 + $0x8] sm:$0xff] }
  0xc2   : > { %477 = vst.msk [vmem:[#allocation3 + $0x10] sm:$0xff] %vm372_vm4, %v469_v24 }
  0xc4   : > { %v540_v26 = vpop.f32.mrf.mxu2  ;;  %v747_v27 = vpop.f32.mrf.mxu0 }
  0xc5   : > { %v570_v28 = vadd.f32 %v562_v25, %v540_v26 }
  0xc6   : > { %v663_v29 = vld [vmem:[#allocation3] sm:$0xff] }
  0xc7   : > { %578 = vst.msk [vmem:[#allocation3 + $0x8] sm:$0xff] %vm372_vm4, %v570_v28  ;;  %v671_v30 = vadd.f32 %v663_v29, %v639_v23  ;;  %v444_v31 = vpop.f32.mrf.mxu1  ;;  %v642_v33 = vpop.f32.mrf.mxu3 }
  0xc8   : > { %v470_v34 = vadd.f32 %v462_v32, %v444_v31 }
  0xc9   : > { %679 = vst.msk [vmem:[#allocation3] sm:$0xff] %vm372_vm4, %v671_v30  ;;  %v563_v35 = vld [vmem:[#allocation3 + $0x10] sm:$0xff] }
  0xca   : > { %478 = vst.msk [vmem:[#allocation3 + $0x18] sm:$0xff] %vm372_vm4, %v470_v34 }
  0xcc   : > { %v543_v36 = vpop.f32.mrf.mxu2  ;;  %v750_v39 = vpop.f32.mrf.mxu0 }
  0xcd   : > { %v571_v37 = vadd.f32 %v563_v35, %v543_v36 }
  0xce   : > { %v664_v38 = vld [vmem:[#allocation3 + $0x8] sm:$0xff] }
  0xcf   : > { %579 = vst.msk [vmem:[#allocation3 + $0x10] sm:$0xff] %vm372_vm4, %v571_v37  ;;  %v672_v40 = vadd.f32 %v664_v38, %v642_v33  ;;  %v447_v41 = vpop.f32.mrf.mxu1  ;;  %v645_v43 = vpop.f32.mrf.mxu3 }
  0xd0   : > { %v765_v44 = vld [vmem:[#allocation3] sm:$0xff]  ;;  %v471_v45 = vadd.f32 %v463_v42, %v447_v41 }
  0xd1   : > { %680 = vst.msk [vmem:[#allocation3 + $0x8] sm:$0xff] %vm372_vm4, %v672_v40  ;;  %v773_v46 = vadd.f32 %v765_v44, %v741_v12  ;;  %v564_v47 = vld [vmem:[#allocation3 + $0x18] sm:$0xff] }
  0xd2   : > { %479 = vst.msk [vmem:[#allocation3 + $0x20] sm:$0xff] %vm372_vm4, %v471_v45 }
  0xd3   : > { %781 = vst.msk [vmem:[#allocation3] sm:$0xff] %vm372_vm4, %v773_v46 }
  0xd4   : > { %v546_v48 = vpop.f32.mrf.mxu2  ;;  %v753_v57 = vpop.f32.mrf.mxu0 }
  0xd5   : > { %v572_v49 = vadd.f32 %v564_v47, %v546_v48 }
  0xd6   : > { %v665_v50 = vld [vmem:[#allocation3 + $0x10] sm:$0xff] }
  0xd7   : > { %580 = vst.msk [vmem:[#allocation3 + $0x18] sm:$0xff] %vm372_vm4, %v572_v49  ;;  %v673_v51 = vadd.f32 %v665_v50, %v645_v43  ;;  %v450_v52 = vpop.f32.mrf.mxu1  ;;  %v648_v54 = vpop.f32.mrf.mxu3 }
  0xd8   : > { %v766_v55 = vld [vmem:[#allocation3 + $0x8] sm:$0xff]  ;;  %v472_v56 = vadd.f32 %v464_v53, %v450_v52 }
  0xd9   : > { %681 = vst.msk [vmem:[#allocation3 + $0x10] sm:$0xff] %vm372_vm4, %v673_v51  ;;  %v774_v58 = vadd.f32 %v766_v55, %v744_v19  ;;  %v565_v59 = vld [vmem:[#allocation3 + $0x20] sm:$0xff] }
  0xda   : > { %480 = vst.msk [vmem:[#allocation3 + $0x28] sm:$0xff] %vm372_vm4, %v472_v56  ;;  %v867_v25 = vld [vmem:[#allocation3] sm:$0xff] }
  0xdb   : > { %782 = vst.msk [vmem:[#allocation3 + $0x8] sm:$0xff] %vm372_vm4, %v774_v58 }
  0xdc   : > { %v549_v60 = vpop.f32.mrf.mxu2  ;;  %v756_v7 = vpop.f32.mrf.mxu0 }
  0xdd   : > { %v573_v61 = vadd.f32 %v565_v59, %v549_v60 }
  0xde   : > { %v666_v62 = vld [vmem:[#allocation3 + $0x18] sm:$0xff] }
  0xdf   : > { %581 = vst.msk [vmem:[#allocation3 + $0x20] sm:$0xff] %vm372_vm4, %v573_v61  ;;  %v674_v63 = vadd.f32 %v666_v62, %v648_v54  ;;  %v453_v0 = vpop.f32.mrf.mxu1  ;;  %v651_v2 = vpop.f32.mrf.mxu3 }
  0xe0   : > { %v767_v3 = vld [vmem:[#allocation3 + $0x10] sm:$0xff]  ;;  %v473_v4 = vadd.f32 %v465_v1, %v453_v0 }
  0xe1   : > { %682 = vst.msk [vmem:[#allocation3 + $0x18] sm:$0xff] %vm372_vm4, %v674_v63  ;;  %v775_v5 = vadd.f32 %v767_v3, %v747_v27  ;;  %v566_v6 = vld [vmem:[#allocation3 + $0x28] sm:$0xff] }
  0xe2   : > { %481 = vst.msk [vmem:[#allocation3 + $0x30] sm:$0xff] %vm372_vm4, %v473_v4  ;;  %v868_v37 = vld [vmem:[#allocation3 + $0x8] sm:$0xff] }
  0xe3   : > { %783 = vst.msk [vmem:[#allocation3 + $0x10] sm:$0xff] %vm372_vm4, %v775_v5 }
  0xe4   : > { %v552_v8 = vpop.f32.mrf.mxu2  ;;  %v759_v20 = vpop.f32.mrf.mxu0 }
  0xe5   : > { %v574_v9 = vadd.f32 %v566_v6, %v552_v8 }
  0xe6   : > { %v667_v10 = vld [vmem:[#allocation3 + $0x20] sm:$0xff] }
  0xe7   : > { %582 = vst.msk [vmem:[#allocation3 + $0x28] sm:$0xff] %vm372_vm4, %v574_v9  ;;  %v675_v11 = vadd.f32 %v667_v10, %v651_v2  ;;  %v456_v12 = vpop.f32.mrf.mxu1  ;;  %v654_v14 = vpop.f32.mrf.mxu3 }
  0xe8   : > { %v768_v15 = vld [vmem:[#allocation3 + $0x18] sm:$0xff]  ;;  %v474_v16 = vadd.f32 %v466_v13, %v456_v12 }
  0xe9   : > { %683 = vst.msk [vmem:[#allocation3 + $0x20] sm:$0xff] %vm372_vm4, %v675_v11  ;;  %v776_v17 = vadd.f32 %v768_v15, %v750_v39  ;;  %v567_v18 = vld [vmem:[#allocation3 + $0x30] sm:$0xff] }
  0xea   : > { %482 = vst.msk [vmem:[#allocation3 + $0x38] sm:$0xff] %vm372_vm4, %v474_v16  ;;  %v869_v48 = vld [vmem:[#allocation3 + $0x10] sm:$0xff] }
  0xeb   : > { %784 = vst.msk [vmem:[#allocation3 + $0x18] sm:$0xff] %vm372_vm4, %v776_v17 }
  0xec   : > { %v555_v19 = vpop.f32.mrf.mxu2  ;;  %v762_v34 = vpop.f32.mrf.mxu0 }
  0xed   : > { %v575_v21 = vadd.f32 %v567_v18, %v555_v19  ;;  %v1746_v18 = vld [vmem:[%s1807_s4] ss:$0 sm:$0xff] }
  0xee   : > { %v668_v22 = vld [vmem:[#allocation3 + $0x28] sm:$0xff] }
  0xef   : > { %583 = vst.msk [vmem:[#allocation3 + $0x30] sm:$0xff] %vm372_vm4, %v575_v21  ;;  %v676_v23 = vadd.f32 %v668_v22, %v654_v14  ;;  %v843_v24 = vpop.f32.mrf.mxu1  ;;  %v657_v26 = vpop.f32.mrf.mxu3 }
  0xf0   : > { %v769_v27 = vld [vmem:[#allocation3 + $0x20] sm:$0xff]  ;;  %v875_v28 = vadd.f32 %v867_v25, %v843_v24 }
  0xf1   : > { %684 = vst.msk [vmem:[#allocation3 + $0x28] sm:$0xff] %vm372_vm4, %v676_v23  ;;  %v777_v29 = vadd.f32 %v769_v27, %v753_v57  ;;  %v568_v30 = vld [vmem:[#allocation3 + $0x38] sm:$0xff] }
  0xf2   : > { %883 = vst.msk [vmem:[#allocation3] sm:$0xff] %vm372_vm4, %v875_v28  ;;  %v870_v60 = vld [vmem:[#allocation3 + $0x18] sm:$0xff] }
  0xf3   : > { %785 = vst.msk [vmem:[#allocation3 + $0x20] sm:$0xff] %vm372_vm4, %v777_v29 }
  0xf4   : > { %v558_v31 = vpop.f32.mrf.mxu2  ;;  %v1150_v52 = vpop.f32.mrf.mxu0 }
  0xf5   : > { %v576_v32 = vadd.f32 %v568_v30, %v558_v31 }
  0xf6   : > { %v669_v33 = vld [vmem:[#allocation3 + $0x30] sm:$0xff] }
  0xf7   : > { %584 = vst.msk [vmem:[#allocation3 + $0x38] sm:$0xff] %vm372_vm4, %v576_v32  ;;  %v677_v35 = vadd.f32 %v669_v33, %v657_v26  ;;  %v846_v36 = vpop.f32.mrf.mxu1  ;;  %v660_v38 = vpop.f32.mrf.mxu3 }
  0xf8   : > { %v770_v39 = vld [vmem:[#allocation3 + $0x28] sm:$0xff]  ;;  %v876_v40 = vadd.f32 %v868_v37, %v846_v36 }
  0xf9   : > { %685 = vst.msk [vmem:[#allocation3 + $0x30] sm:$0xff] %vm372_vm4, %v677_v35  ;;  %v778_v41 = vadd.f32 %v770_v39, %v756_v7  ;;  %v970_v42 = vld [vmem:[#allocation3] sm:$0xff] }
  0xfa   : > { %884 = vst.msk [vmem:[#allocation3 + $0x8] sm:$0xff] %vm372_vm4, %v876_v40  ;;  %v871_v8 = vld [vmem:[#allocation3 + $0x20] sm:$0xff] }
  0xfb   : > { %786 = vst.msk [vmem:[#allocation3 + $0x28] sm:$0xff] %vm372_vm4, %v778_v41 }
  0xfc   : > { %v946_v43 = vpop.f32.mrf.mxu2  ;;  %v1153_v2 = vpop.f32.mrf.mxu0 }
  0xfd   : > { %v978_v44 = vadd.f32 %v970_v42, %v946_v43 }
  0xfe   : > { %v670_v45 = vld [vmem:[#allocation3 + $0x38] sm:$0xff] }
  0xff   : > { %986 = vst.msk [vmem:[#allocation3] sm:$0xff] %vm372_vm4, %v978_v44  ;;  %v678_v46 = vadd.f32 %v670_v45, %v660_v38  ;;  %v849_v47 = vpop.f32.mrf.mxu1  ;;  %v1048_v49 = vpop.f32.mrf.mxu3 }
 0x100   : > { %v771_v50 = vld [vmem:[#allocation3 + $0x30] sm:$0xff]  ;;  %v877_v51 = vadd.f32 %v869_v48, %v849_v47 }
 0x101   : > { %686 = vst.msk [vmem:[#allocation3 + $0x38] sm:$0xff] %vm372_vm4, %v678_v46  ;;  %v779_v53 = vadd.f32 %v771_v50, %v759_v20  ;;  %v971_v54 = vld [vmem:[#allocation3 + $0x8] sm:$0xff] }
 0x102   : > { %885 = vst.msk [vmem:[#allocation3 + $0x10] sm:$0xff] %vm372_vm4, %v877_v51  ;;  %v872_v21 = vld [vmem:[#allocation3 + $0x28] sm:$0xff] }
 0x103   : > { %787 = vst.msk [vmem:[#allocation3 + $0x30] sm:$0xff] %vm372_vm4, %v779_v53 }
 0x104   : > { %v949_v55 = vpop.f32.mrf.mxu2  ;;  %v1156_v15 = vpop.f32.mrf.mxu0 }
 0x105   : > { %v979_v56 = vadd.f32 %v971_v54, %v949_v55 }
 0x106   : > { %v1072_v57 = vld [vmem:[#allocation3] sm:$0xff] }
 0x107   : > { %987 = vst.msk [vmem:[#allocation3 + $0x8] sm:$0xff] %vm372_vm4, %v979_v56  ;;  %v1080_v58 = vadd.f32 %v1072_v57, %v1048_v49  ;;  %v852_v59 = vpop.f32.mrf.mxu1  ;;  %v1051_v61 = vpop.f32.mrf.mxu3 }
 0x108   : > { %v772_v62 = vld [vmem:[#allocation3 + $0x38] sm:$0xff]  ;;  %v878_v63 = vadd.f32 %v870_v60, %v852_v59 }
 0x109   : > { %1088 = vst.msk [vmem:[#allocation3] sm:$0xff] %vm372_vm4, %v1080_v58  ;;  %v780_v0 = vadd.f32 %v772_v62, %v762_v34  ;;  %v972_v1 = vld [vmem:[#allocation3 + $0x10] sm:$0xff] }
 0x10a   : > { %886 = vst.msk [vmem:[#allocation3 + $0x18] sm:$0xff] %vm372_vm4, %v878_v63  ;;  %v873_v36 = vld [vmem:[#allocation3 + $0x30] sm:$0xff] }
 0x10b   : > { %788 = vst.msk [vmem:[#allocation3 + $0x38] sm:$0xff] %vm372_vm4, %v780_v0 }
 0x10c   : > { %v952_v3 = vpop.f32.mrf.mxu2  ;;  %v1159_v33 = vpop.f32.mrf.mxu0 }
 0x10d   : > { %v980_v4 = vadd.f32 %v972_v1, %v952_v3 }
 0x10e   : > { %v1073_v5 = vld [vmem:[#allocation3 + $0x8] sm:$0xff] }
 0x10f   : > { %988 = vst.msk [vmem:[#allocation3 + $0x10] sm:$0xff] %vm372_vm4, %v980_v4  ;;  %v1081_v6 = vadd.f32 %v1073_v5, %v1051_v61  ;;  %v855_v7 = vpop.f32.mrf.mxu1  ;;  %v1054_v9 = vpop.f32.mrf.mxu3 }
 0x110   : > { %v1174_v10 = vld [vmem:[#allocation3] sm:$0xff]  ;;  %v879_v11 = vadd.f32 %v871_v8, %v855_v7 }
 0x111   : > { %1089 = vst.msk [vmem:[#allocation3 + $0x8] sm:$0xff] %vm372_vm4, %v1081_v6  ;;  %v1182_v12 = vadd.f32 %v1174_v10, %v1150_v52  ;;  %v973_v13 = vld [vmem:[#allocation3 + $0x18] sm:$0xff] }
 0x112   : > { %887 = vst.msk [vmem:[#allocation3 + $0x20] sm:$0xff] %vm372_vm4, %v879_v11  ;;  %v874_v49 = vld [vmem:[#allocation3 + $0x38] sm:$0xff] }
 0x113   : > { %1190 = vst.msk [vmem:[#allocation3] sm:$0xff] %vm372_vm4, %v1182_v12 }
 0x114   : > { %v955_v14 = vpop.f32.mrf.mxu2  ;;  %v1162_v55 = vpop.f32.mrf.mxu0 }
 0x115   : > { %v981_v16 = vadd.f32 %v973_v13, %v955_v14 }
 0x116   : > { %v1074_v17 = vld [vmem:[#allocation3 + $0x10] sm:$0xff] }
 0x117   : > { %989 = vst.msk [vmem:[#allocation3 + $0x18] sm:$0xff] %vm372_vm4, %v981_v16  ;;  %v1082_v19 = vadd.f32 %v1074_v17, %v1054_v9  ;;  %v858_v20 = vpop.f32.mrf.mxu1  ;;  %v1057_v22 = vpop.f32.mrf.mxu3 }
 0x118   : > { %v1175_v23 = vld [vmem:[#allocation3 + $0x8] sm:$0xff]  ;;  %v880_v24 = vadd.f32 %v872_v21, %v858_v20 }
 0x119   : > { %1090 = vst.msk [vmem:[#allocation3 + $0x10] sm:$0xff] %vm372_vm4, %v1082_v19  ;;  %v1183_v25 = vadd.f32 %v1175_v23, %v1153_v2  ;;  %v974_v27 = vld [vmem:[#allocation3 + $0x20] sm:$0xff] }
 0x11a   : > { %v1198_v26 = vld [vmem:[#allocation3] sm:$0xff]  ;;  %888 = vst.msk [vmem:[#allocation3 + $0x28] sm:$0xff] %vm372_vm4, %v880_v24 }
 0x11b   : > { %v1210_v28 = vadd.f32 %v1746_v18, %v1198_v26  ;;  %1191 = vst.msk [vmem:[#allocation3 + $0x8] sm:$0xff] %vm372_vm4, %v1183_v25 }
 0x11c   : > { %v958_v29 = vpop.f32.mrf.mxu2  ;;  %v1165_v6 = vpop.f32.mrf.mxu0 }
 0x11d   : > { %v1218_v30 = vmax.f32 %v1210_v28, 0.0  ;;  %v982_v31 = vadd.f32 %v974_v27, %v958_v29 }
 0x11e   : > { %v1075_v32 = vld [vmem:[#allocation3 + $0x18] sm:$0xff] }
 0x11f   : > { %1226 = vst.msk [vmem:[%s1758_s28] sm:$0xff] %vm372_vm4, %v1218_v30  ;;  %v1083_v34 = vadd.f32 %v1075_v32, %v1057_v22  ;;  %v861_v35 = vpop.f32.mrf.mxu1  ;;  %v1060_v37 = vpop.f32.mrf.mxu3 }
 0x120   : > { %990 = vst.msk [vmem:[#allocation3 + $0x20] sm:$0xff] %vm372_vm4, %v982_v31  ;;  %v1176_v38 = vld [vmem:[#allocation3 + $0x10] sm:$0xff]  ;;  %v881_v39 = vadd.f32 %v873_v36, %v861_v35 }
 0x121   : > { %1091 = vst.msk [vmem:[#allocation3 + $0x18] sm:$0xff] %vm372_vm4, %v1083_v34  ;;  %v1184_v40 = vadd.f32 %v1176_v38, %v1156_v15  ;;  %v975_v42 = vld [vmem:[#allocation3 + $0x28] sm:$0xff] }
 0x122   : > { %v1199_v41 = vld [vmem:[#allocation3 + $0x8] sm:$0xff]  ;;  %889 = vst.msk [vmem:[#allocation3 + $0x30] sm:$0xff] %vm372_vm4, %v881_v39 }
 0x123   : > { %v1211_v43 = vadd.f32 %v1746_v18, %v1199_v41  ;;  %1192 = vst.msk [vmem:[#allocation3 + $0x10] sm:$0xff] %vm372_vm4, %v1184_v40 }
 0x124   : > { %v961_v44 = vpop.f32.mrf.mxu2  ;;  %v1168_v17 = vpop.f32.mrf.mxu0 }
 0x125   : > { %v1219_v45 = vmax.f32 %v1211_v43, 0.0  ;;  %v983_v46 = vadd.f32 %v975_v42, %v961_v44 }
 0x127   : > { %1227 = vst.msk [vmem:[%s1758_s28 + $0x8] sm:$0xff] %vm372_vm4, %v1219_v45  ;;  %v1076_v47 = vld [vmem:[#allocation3 + $0x20] sm:$0xff]  ;;  %v864_v48 = vpop.f32.mrf.mxu1  ;;  %v1063_v54 = vpop.f32.mrf.mxu3 }
 0x128   : > { %991 = vst.msk [vmem:[#allocation3 + $0x28] sm:$0xff] %vm372_vm4, %v983_v46  ;;  %v1084_v50 = vadd.f32 %v1076_v47, %v1060_v37  ;;  %v1177_v51 = vld [vmem:[#allocation3 + $0x18] sm:$0xff]  ;;  %v882_v52 = vadd.f32 %v874_v49, %v864_v48 }
 0x129   : > { %v1185_v53 = vadd.f32 %v1177_v51, %v1159_v33  ;;  %v976_v57 = vld [vmem:[#allocation3 + $0x30] sm:$0xff] }
 0x12a   : > { %v1200_v56 = vld [vmem:[#allocation3 + $0x10] sm:$0xff]  ;;  %1092 = vst.msk [vmem:[#allocation3 + $0x20] sm:$0xff] %vm372_vm4, %v1084_v50 }
 0x12b   : > { %v1212_v58 = vadd.f32 %v1746_v18, %v1200_v56  ;;  %1193 = vst.msk [vmem:[#allocation3 + $0x18] sm:$0xff] %vm372_vm4, %v1185_v53 }
 0x12c   : > { %890 = vst.msk [vmem:[#allocation3 + $0x38] sm:$0xff] %vm372_vm4, %v882_v52  ;;  %v964_v59 = vpop.f32.mrf.mxu2  ;;  %v1171_v27 = vpop.f32.mrf.mxu0 }
 0x12d   : > { %v1220_v60 = vmax.f32 %v1212_v58, 0.0  ;;  %v984_v61 = vadd.f32 %v976_v57, %v964_v59 }
 0x12f   : > { %1228 = vst.msk [vmem:[%s1758_s28 + $0x10] sm:$0xff] %vm372_vm4, %v1220_v60  ;;  %v1077_v62 = vld [vmem:[#allocation3 + $0x28] sm:$0xff]  ;;  %v1066_v5 = vpop.f32.mrf.mxu3 }
 0x130   : > { %992 = vst.msk [vmem:[#allocation3 + $0x30] sm:$0xff] %vm372_vm4, %v984_v61  ;;  %v1085_v63 = vadd.f32 %v1077_v62, %v1063_v54 }
 0x131   : > { %v1178_v0 = vld [vmem:[#allocation3 + $0x20] sm:$0xff] }
 0x132   : > { %v1201_v1 = vld [vmem:[#allocation3 + $0x18] sm:$0xff]  ;;  %1093 = vst.msk [vmem:[#allocation3 + $0x28] sm:$0xff] %vm372_vm4, %v1085_v63  ;;  %v1186_v2 = vadd.f32 %v1178_v0, %v1162_v55 }
 0x133   : > { %v1213_v3 = vadd.f32 %v1746_v18, %v1201_v1  ;;  %v977_v4 = vld [vmem:[#allocation3 + $0x38] sm:$0xff] }
 0x134   : > { %1194 = vst.msk [vmem:[#allocation3 + $0x20] sm:$0xff] %vm372_vm4, %v1186_v2  ;;  %v967_v7 = vpop.f32.mrf.mxu2 }
 0x135   : > { %v1221_v8 = vmax.f32 %v1213_v3, 0.0  ;;  %v985_v9 = vadd.f32 %v977_v4, %v967_v7 }
 0x137   : > { %1229 = vst.msk [vmem:[%s1758_s28 + $0x18] sm:$0xff] %vm372_vm4, %v1221_v8  ;;  %v1078_v10 = vld [vmem:[#allocation3 + $0x30] sm:$0xff]  ;;  %v1069_v16 = vpop.f32.mrf.mxu3 }
 0x138   : > { %993 = vst.msk [vmem:[#allocation3 + $0x38] sm:$0xff] %vm372_vm4, %v985_v9  ;;  %v1086_v11 = vadd.f32 %v1078_v10, %v1066_v5 }
 0x139   : > { %v1179_v12 = vld [vmem:[#allocation3 + $0x28] sm:$0xff] }
 0x13a   : > { %1094 = vst.msk [vmem:[#allocation3 + $0x30] sm:$0xff] %vm372_vm4, %v1086_v11  ;;  %v1187_v13 = vadd.f32 %v1179_v12, %v1165_v6 }
 0x13b   : > { %v1202_v14 = vld [vmem:[#allocation3 + $0x20] sm:$0xff] }
 0x13c   : > { %v1214_v15 = vadd.f32 %v1746_v18, %v1202_v14  ;;  %1195 = vst.msk [vmem:[#allocation3 + $0x28] sm:$0xff] %vm372_vm4, %v1187_v13 }
 0x13e   : > { %v1222_v19 = vmax.f32 %v1214_v15, 0.0 }
 0x13f   : > { %v1079_v20 = vld [vmem:[#allocation3 + $0x38] sm:$0xff] }
 0x140   : > { %1230 = vst.msk [vmem:[%s1758_s28 + $0x20] sm:$0xff] %vm372_vm4, %v1222_v19  ;;  %v1087_v21 = vadd.f32 %v1079_v20, %v1069_v16 }
 0x141   : > { %v1180_v22 = vld [vmem:[#allocation3 + $0x30] sm:$0xff] }
 0x142   : > { %1095 = vst.msk [vmem:[#allocation3 + $0x38] sm:$0xff] %vm372_vm4, %v1087_v21  ;;  %v1188_v23 = vadd.f32 %v1180_v22, %v1168_v17 }
 0x143   : > { %v1203_v24 = vld [vmem:[#allocation3 + $0x28] sm:$0xff] }
 0x144   : > { %v1215_v25 = vadd.f32 %v1746_v18, %v1203_v24  ;;  %1196 = vst.msk [vmem:[#allocation3 + $0x30] sm:$0xff] %vm372_vm4, %v1188_v23 }
 0x146   : > { %v1223_v26 = vmax.f32 %v1215_v25, 0.0 }
 0x148   : > { %1231 = vst.msk [vmem:[%s1758_s28 + $0x28] sm:$0xff] %vm372_vm4, %v1223_v26 }
 0x149   : > { %v1181_v28 = vld [vmem:[#allocation3 + $0x38] sm:$0xff] }
 0x14a   : > { %v1189_v29 = vadd.f32 %v1181_v28, %v1171_v27 }
 0x14b   : > { %v1204_v30 = vld [vmem:[#allocation3 + $0x30] sm:$0xff] }
 0x14c   : > { %v1216_v31 = vadd.f32 %v1746_v18, %v1204_v30  ;;  %1197 = vst.msk [vmem:[#allocation3 + $0x38] sm:$0xff] %vm372_vm4, %v1189_v29 }
 0x14e   : > { %v1224_v32 = vmax.f32 %v1216_v31, 0.0 }
 0x150   : > { %1232 = vst.msk [vmem:[%s1758_s28 + $0x30] sm:$0xff] %vm372_vm4, %v1224_v32 }
 0x153   : > { %v1205_v33 = vld [vmem:[#allocation3 + $0x38] sm:$0xff] }
 0x154   : > { %v1217_v34 = vadd.f32 %v1746_v18, %v1205_v33 }
 0x156   : > { %v1225_v35 = vmax.f32 %v1217_v34, 0.0 }
 0x158   : > { %1233 = vst.msk [vmem:[%s1758_s28 + $0x38] sm:$0xff] %vm372_vm4, %v1225_v35 }
 0x159 PF: > { %s15_s18 = sadd.s32 1, %s1412_s18  }
 0x15a   : > { %p12_p4 = scmp.ge.s32.totalorder %s15_s18, 4  }
 0x15c   :  { %14 = sbr.rel (!%p12_p4) target bundleno = 1 (0x1), region = 81 }

</bundles_post_ra>
